<compile_context>
chip_gen: v6e
topology: v6e:2x2x1
jax: 0.10.0
libtpu: 0.0.40
codegen_flags: <defaults>
</compile_context>

<pallas_src>
import functools

import jax
import jax.numpy as jnp
from jax.experimental import pallas as pl
from jax.experimental.pallas import tpu as pltpu

SQRT_2_OVER_PI = 0.7978845608028654


def _gelu_tanh(x):
    return 0.5 * x * (1.0 + jnp.tanh(SQRT_2_OVER_PI * (x + 0.044715 * x * x * x)))


def dilated_conv_kernel(x_ref, w_ref, b_ref, out_ref, xpad_ref, *, dilation, pad):
    # x_ref   : (Bt, H,  W,  C)  un-padded input block (also the residual branch)
    # w_ref   : (k,  k,  C)      depthwise conv weight with BN scale folded in
    # b_ref   : (1,  C)          folded BN shift (conv itself has bias=False)
    # out_ref : (Bt, H,  W,  C)
    # xpad_ref: (Bt, Hp, Wp, C)  VMEM scratch used as the zero-padded tile
    Bt, H, W, C = x_ref.shape
    k = w_ref.shape[0]
    Hp = H + 2 * pad
    Wp = W + 2 * pad

    # Zero only the halo border (cheap, VMEM-only; done every step so it is safe even if the
    # grid is sharded across cores), then place the un-padded tile in the center.
    if pad > 0:
        z_rows = jnp.zeros((Bt, pad, Wp, C), xpad_ref.dtype)
        xpad_ref[:, 0:pad, :, :] = z_rows
        xpad_ref[:, pad + H:Hp, :, :] = z_rows
        z_cols = jnp.zeros((Bt, Hp, pad, C), xpad_ref.dtype)
        xpad_ref[:, :, 0:pad, :] = z_cols
        xpad_ref[:, :, pad + W:Wp, :] = z_cols
    xpad_ref[:, pad:pad + H, pad:pad + W, :] = x_ref[...]

    w = w_ref[...]                                     # (k, k, C), ~1 vreg, resident

    # First tap initializes the accumulator together with the folded BN bias.
    acc = (xpad_ref[:, 0:H, 0:W, :].astype(jnp.float32) * w[0, 0] + b_ref[0])
    for i in range(k):                                 # k*k static taps, vectorized over (Bt,H,W,C)
        for j in range(k):
            if i == 0 and j == 0:
                continue
            patch = xpad_ref[:, i * dilation:i * dilation + H,
                             j * dilation:j * dilation + W, :]   # Ref-view slice (zero cost)
            acc = acc + patch.astype(jnp.float32) * w[i, j]

    y = _gelu_tanh(acc)                                # GELU (tanh approximation)
    out_ref[...] = (x_ref[...].astype(jnp.float32) + y).astype(out_ref.dtype)


def _choose_batch_block(B, bytes_per_image, target_bytes=1 << 20):
    """Pick how many images to process per grid step (amortize per-step overhead,
    keep >= 2 grid steps for pipelining / megacore)."""
    bt = 1
    while (bt * 2 <= B and B % (bt * 2) == 0 and (B // (bt * 2)) >= 2
           and bt * bytes_per_image < target_bytes):
        bt *= 2
    return bt


def dilated_conv_block(x_nchw, conv_w, gamma, beta, run_mean, run_var, *,
                       eps=1e-5, dilation=1, stride=1):
    """x_nchw: (B, C, H, W); conv_w: (C, 1, k, k) (PyTorch depthwise layout)."""
    assert stride == 1, "residual connection requires stride == 1"
    B, C, H, W = x_nchw.shape
    k = conv_w.shape[-1]
    assert k % 2 == 1, "odd kernel size required so padding preserves spatial size"
    pad = ((k - 1) // 2) * dilation
    Hp, Wp = H + 2 * pad, W + 2 * pad

    # Fold eval-mode BatchNorm2d into the conv weight / bias (one-time, wrapper-side).
    scale = gamma / jnp.sqrt(run_var + eps)                                  # (C,)
    shift = beta - run_mean * scale                                          # (C,)
    w_eff = jnp.transpose(conv_w[:, 0], (1, 2, 0)) * scale[None, None, :]    # (k, k, C)
    b_eff = shift.reshape(1, C)                                              # (1, C)

    # NCHW -> NHWC so C is the lane (last) dimension. (No jnp.pad: padding is done in-kernel.)
    x = jnp.transpose(x_nchw, (0, 2, 3, 1))                                  # (B, H, W, C)

    bt = _choose_batch_block(B, H * W * C * x.dtype.itemsize)
    grid = (B // bt,)

    kern = functools.partial(dilated_conv_kernel, dilation=dilation, pad=pad)
    itemsize = x.dtype.itemsize
    cost = pl.CostEstimate(
        flops=B * H * W * C * (2 * k * k + 10),
        transcendentals=B * H * W * C,
        bytes_accessed=2 * B * H * W * C * itemsize + int(w_eff.nbytes) + int(b_eff.nbytes),
    )

    out_nhwc = pl.pallas_call(
        kern,
        out_shape=jax.ShapeDtypeStruct((B, H, W, C), x.dtype),
        grid_spec=pltpu.PrefetchScalarGridSpec(
            num_scalar_prefetch=0,
            grid=grid,
            in_specs=[
                pl.BlockSpec((bt, H, W, C), lambda b: (b, 0, 0, 0)),   # input (and residual)
                pl.BlockSpec((k, k, C), lambda b: (0, 0, 0)),          # folded weight (grid-invariant)
                pl.BlockSpec((1, C), lambda b: (0, 0)),                # folded bias
            ],
            out_specs=pl.BlockSpec((bt, H, W, C), lambda b: (b, 0, 0, 0)),
            scratch_shapes=[pltpu.VMEM((bt, Hp, Wp, C), x.dtype)],     # in-kernel zero-padded tile
        ),
        compiler_params=pltpu.CompilerParams(dimension_semantics=("parallel",)),
        cost_estimate=cost,
    )(x, w_eff, b_eff)

    return jnp.transpose(out_nhwc, (0, 3, 1, 2))                             # back to NCHW


def reference(x, conv_w, gamma, beta, run_mean, run_var, eps, dilation, stride):
    # Pure-JAX reference matching the PyTorch forward (eval-mode BN, tanh-approx GELU).
    B, C, H, W = x.shape
    k = conv_w.shape[-1]
    pad = ((k - 1) // 2) * dilation
    y = jax.lax.conv_general_dilated(
        x, conv_w,
        window_strides=(stride, stride),
        padding=((pad, pad), (pad, pad)),
        rhs_dilation=(dilation, dilation),
        dimension_numbers=('NCHW', 'OIHW', 'NCHW'),
        feature_group_count=C,
        precision=jax.lax.Precision.HIGHEST,
    )
    bc = lambda v: v[None, :, None, None]
    y = (y - bc(run_mean)) / jnp.sqrt(bc(run_var) + eps) * bc(gamma) + bc(beta)
    y = _gelu_tanh(y)
    return x + y


if __name__ == "__main__":
    B, C, H, W = 2, 128, 16, 16          # dim=128 keeps the channel/lane axis dense
    k, dilation, stride = 3, 2, 1
    eps = 1e-5

    key = jax.random.PRNGKey(0)
    kx, kw, kg, kb, km, kv = jax.random.split(key, 6)

    x = jax.random.normal(kx, (B, C, H, W), dtype=jnp.float32)

    # Depthwise conv weight (PyTorch layout for groups=dim: (C, 1, k, k)), bias=False.
    conv_w = jax.random.normal(kw, (C, 1, k, k), dtype=jnp.float32) * (1.0 / k)

    # BatchNorm2d params / running stats (eval mode).
    gamma = 1.0 + 0.1 * jax.random.normal(kg, (C,), dtype=jnp.float32)
    beta = 0.1 * jax.random.normal(kb, (C,), dtype=jnp.float32)
    run_mean = 0.1 * jax.random.normal(km, (C,), dtype=jnp.float32)
    run_var = jnp.abs(jax.random.normal(kv, (C,), dtype=jnp.float32)) + 0.5

    out = dilated_conv_block(x, conv_w, gamma, beta, run_mean, run_var,
                             eps=eps, dilation=dilation, stride=stride)
    out = jax.block_until_ready(out)

    ref = reference(x, conv_w, gamma, beta, run_mean, run_var, eps, dilation, stride)
    assert out.shape == (B, C, H, W)
    assert jnp.allclose(out, ref, atol=1e-4, rtol=1e-4), "mismatch vs reference"

    print("KERNEL_OK")
</pallas_src>

<mosaic_0001>
module attributes {stable_mosaic.version = 11 : i64} {
  func.func @dilated_conv_kernel(%arg0: i32, %arg1: memref<1x16x16x128xf32, #tpu.memory_space<vmem>>, %arg2: memref<3x3x128xf32, #tpu.memory_space<vmem>>, %arg3: memref<1x128xf32, #tpu.memory_space<vmem>>, %arg4: memref<1x16x16x128xf32, #tpu.memory_space<vmem>>, %arg5: memref<1x20x20x128xf32, #tpu.memory_space<vmem>>) attributes {dimension_semantics = [#tpu.dimension_semantics<parallel>], iteration_bounds = array<i64: 2>, scalar_prefetch = 0 : i64, scratch_operands = 1 : i64, tpu.core_type = #tpu.core_type<tc>, window_params = [{transform_indices = @transform_0, window_bounds = array<i64: 1, 16, 16, 128>}, {pipeline_mode = #tpu.pipeline_mode<synchronous>, transform_indices = @transform_1, window_bounds = array<i64: 3, 3, 128>}, {pipeline_mode = #tpu.pipeline_mode<synchronous>, transform_indices = @transform_2, window_bounds = array<i64: 1, 128>}, {transform_indices = @transform_3, window_bounds = array<i64: 1, 16, 16, 128>}]} {
    %cst = arith.constant 0.000000e+00 : f32
    %0 = vector.broadcast %cst : f32 to vector<1x2x20x128xf32>
    %c0 = arith.constant 0 : index
    %c0_0 = arith.constant 0 : index
    %c0_1 = arith.constant 0 : index
    %c0_2 = arith.constant 0 : index
    %1 = vector.load %arg5[%c0, %c0_0, %c0_1, %c0_2] : memref<1x20x20x128xf32, #tpu.memory_space<vmem>>, vector<1x2x20x128xf32>
    tpu.vector_store %arg5[%c0, %c0_0, %c0_1, %c0_2], %0 {strides = array<i32>} : memref<1x20x20x128xf32, #tpu.memory_space<vmem>>, vector<1x2x20x128xf32>,
    %c0_3 = arith.constant 0 : index
    %c18 = arith.constant 18 : index
    %c0_4 = arith.constant 0 : index
    %c0_5 = arith.constant 0 : index
    %2 = vector.load %arg5[%c0_3, %c18, %c0_4, %c0_5] : memref<1x20x20x128xf32, #tpu.memory_space<vmem>>, vector<1x2x20x128xf32>
    tpu.vector_store %arg5[%c0_3, %c18, %c0_4, %c0_5], %0 {strides = array<i32>} : memref<1x20x20x128xf32, #tpu.memory_space<vmem>>, vector<1x2x20x128xf32>,
    %cst_6 = arith.constant 0.000000e+00 : f32
    %3 = vector.broadcast %cst_6 : f32 to vector<1x20x2x128xf32>
    %c0_7 = arith.constant 0 : index
    %c0_8 = arith.constant 0 : index
    %c0_9 = arith.constant 0 : index
    %c0_10 = arith.constant 0 : index
    %4 = vector.load %arg5[%c0_7, %c0_8, %c0_9, %c0_10] : memref<1x20x20x128xf32, #tpu.memory_space<vmem>>, vector<1x20x2x128xf32>
    tpu.vector_store %arg5[%c0_7, %c0_8, %c0_9, %c0_10], %3 {strides = array<i32>} : memref<1x20x20x128xf32, #tpu.memory_space<vmem>>, vector<1x20x2x128xf32>,
    %c0_11 = arith.constant 0 : index
    %c0_12 = arith.constant 0 : index
    %c18_13 = arith.constant 18 : index
    %c0_14 = arith.constant 0 : index
    %5 = vector.load %arg5[%c0_11, %c0_12, %c18_13, %c0_14] : memref<1x20x20x128xf32, #tpu.memory_space<vmem>>, vector<1x20x2x128xf32>
    tpu.vector_store %arg5[%c0_11, %c0_12, %c18_13, %c0_14], %3 {strides = array<i32>} : memref<1x20x20x128xf32, #tpu.memory_space<vmem>>, vector<1x20x2x128xf32>,
    %c0_15 = arith.constant 0 : index
    %c0_16 = arith.constant 0 : index
    %c0_17 = arith.constant 0 : index
    %c0_18 = arith.constant 0 : index
    %6 = vector.load %arg1[%c0_15, %c0_16, %c0_17, %c0_18] : memref<1x16x16x128xf32, #tpu.memory_space<vmem>>, vector<1x16x16x128xf32>
    %c0_19 = arith.constant 0 : index
    %c2 = arith.constant 2 : index
    %c2_20 = arith.constant 2 : index
    %c0_21 = arith.constant 0 : index
    %7 = vector.load %arg5[%c0_19, %c2, %c2_20, %c0_21] : memref<1x20x20x128xf32, #tpu.memory_space<vmem>>, vector<1x16x16x128xf32>
    tpu.vector_store %arg5[%c0_19, %c2, %c2_20, %c0_21], %6 {strides = array<i32>} : memref<1x20x20x128xf32, #tpu.memory_space<vmem>>, vector<1x16x16x128xf32>,
    %c0_22 = arith.constant 0 : index
    %c0_23 = arith.constant 0 : index
    %c0_24 = arith.constant 0 : index
    %8 = vector.load %arg2[%c0_22, %c0_23, %c0_24] : memref<3x3x128xf32, #tpu.memory_space<vmem>>, vector<3x3x128xf32>
    %c0_25 = arith.constant 0 : index
    %c0_26 = arith.constant 0 : index
    %c0_27 = arith.constant 0 : index
    %c0_28 = arith.constant 0 : index
    %9 = vector.load %arg5[%c0_25, %c0_26, %c0_27, %c0_28] : memref<1x20x20x128xf32, #tpu.memory_space<vmem>>, vector<1x16x16x128xf32>
    %10 = vector.extract_strided_slice %8 {offsets = [0, 0, 0], sizes = [1, 1, 128], strides = [1, 1, 1]} : vector<3x3x128xf32> to vector<1x1x128xf32>
    %11 = vector.shape_cast %10 : vector<1x1x128xf32> to vector<128xf32>
    %12 = vector.shape_cast %11 : vector<128xf32> to vector<1x1x1x128xf32>
    %13 = vector.broadcast %12 : vector<1x1x1x128xf32> to vector<1x16x16x128xf32>
    %14 = arith.mulf %9, %13 : vector<1x16x16x128xf32>
    %c0_29 = arith.constant 0 : index
    %c0_30 = arith.constant 0 : index
    %15 = vector.load %arg3[%c0_29, %c0_30] : memref<1x128xf32, #tpu.memory_space<vmem>>, vector<1x128xf32>
    %16 = vector.shape_cast %15 : vector<1x128xf32> to vector<128xf32>
    %17 = vector.shape_cast %16 : vector<128xf32> to vector<1x1x1x128xf32>
    %18 = vector.broadcast %17 : vector<1x1x1x128xf32> to vector<1x16x16x128xf32>
    %19 = arith.addf %14, %18 : vector<1x16x16x128xf32>
    %c0_31 = arith.constant 0 : index
    %c0_32 = arith.constant 0 : index
    %c2_33 = arith.constant 2 : index
    %c0_34 = arith.constant 0 : index
    %20 = vector.load %arg5[%c0_31, %c0_32, %c2_33, %c0_34] : memref<1x20x20x128xf32, #tpu.memory_space<vmem>>, vector<1x16x16x128xf32>
    %21 = vector.extract_strided_slice %8 {offsets = [0, 1, 0], sizes = [1, 1, 128], strides = [1, 1, 1]} : vector<3x3x128xf32> to vector<1x1x128xf32>
    %22 = vector.shape_cast %21 : vector<1x1x128xf32> to vector<128xf32>
    %23 = vector.shape_cast %22 : vector<128xf32> to vector<1x1x1x128xf32>
    %24 = vector.broadcast %23 : vector<1x1x1x128xf32> to vector<1x16x16x128xf32>
    %25 = arith.mulf %20, %24 : vector<1x16x16x128xf32>
    %26 = arith.addf %19, %25 : vector<1x16x16x128xf32>
    %c0_35 = arith.constant 0 : index
    %c0_36 = arith.constant 0 : index
    %c4 = arith.constant 4 : index
    %c0_37 = arith.constant 0 : index
    %27 = vector.load %arg5[%c0_35, %c0_36, %c4, %c0_37] : memref<1x20x20x128xf32, #tpu.memory_space<vmem>>, vector<1x16x16x128xf32>
    %28 = vector.extract_strided_slice %8 {offsets = [0, 2, 0], sizes = [1, 1, 128], strides = [1, 1, 1]} : vector<3x3x128xf32> to vector<1x1x128xf32>
    %29 = vector.shape_cast %28 : vector<1x1x128xf32> to vector<128xf32>
    %30 = vector.shape_cast %29 : vector<128xf32> to vector<1x1x1x128xf32>
    %31 = vector.broadcast %30 : vector<1x1x1x128xf32> to vector<1x16x16x128xf32>
    %32 = arith.mulf %27, %31 : vector<1x16x16x128xf32>
    %33 = arith.addf %26, %32 : vector<1x16x16x128xf32>
    %c0_38 = arith.constant 0 : index
    %c2_39 = arith.constant 2 : index
    %c0_40 = arith.constant 0 : index
    %c0_41 = arith.constant 0 : index
    %34 = vector.load %arg5[%c0_38, %c2_39, %c0_40, %c0_41] : memref<1x20x20x128xf32, #tpu.memory_space<vmem>>, vector<1x16x16x128xf32>
    %35 = vector.extract_strided_slice %8 {offsets = [1, 0, 0], sizes = [1, 1, 128], strides = [1, 1, 1]} : vector<3x3x128xf32> to vector<1x1x128xf32>
    %36 = vector.shape_cast %35 : vector<1x1x128xf32> to vector<128xf32>
    %37 = vector.shape_cast %36 : vector<128xf32> to vector<1x1x1x128xf32>
    %38 = vector.broadcast %37 : vector<1x1x1x128xf32> to vector<1x16x16x128xf32>
    %39 = arith.mulf %34, %38 : vector<1x16x16x128xf32>
    %40 = arith.addf %33, %39 : vector<1x16x16x128xf32>
    %c0_42 = arith.constant 0 : index
    %c2_43 = arith.constant 2 : index
    %c2_44 = arith.constant 2 : index
    %c0_45 = arith.constant 0 : index
    %41 = vector.load %arg5[%c0_42, %c2_43, %c2_44, %c0_45] : memref<1x20x20x128xf32, #tpu.memory_space<vmem>>, vector<1x16x16x128xf32>
    %42 = vector.extract_strided_slice %8 {offsets = [1, 1, 0], sizes = [1, 1, 128], strides = [1, 1, 1]} : vector<3x3x128xf32> to vector<1x1x128xf32>
    %43 = vector.shape_cast %42 : vector<1x1x128xf32> to vector<128xf32>
    %44 = vector.shape_cast %43 : vector<128xf32> to vector<1x1x1x128xf32>
    %45 = vector.broadcast %44 : vector<1x1x1x128xf32> to vector<1x16x16x128xf32>
    %46 = arith.mulf %41, %45 : vector<1x16x16x128xf32>
    %47 = arith.addf %40, %46 : vector<1x16x16x128xf32>
    %c0_46 = arith.constant 0 : index
    %c2_47 = arith.constant 2 : index
    %c4_48 = arith.constant 4 : index
    %c0_49 = arith.constant 0 : index
    %48 = vector.load %arg5[%c0_46, %c2_47, %c4_48, %c0_49] : memref<1x20x20x128xf32, #tpu.memory_space<vmem>>, vector<1x16x16x128xf32>
    %49 = vector.extract_strided_slice %8 {offsets = [1, 2, 0], sizes = [1, 1, 128], strides = [1, 1, 1]} : vector<3x3x128xf32> to vector<1x1x128xf32>
    %50 = vector.shape_cast %49 : vector<1x1x128xf32> to vector<128xf32>
    %51 = vector.shape_cast %50 : vector<128xf32> to vector<1x1x1x128xf32>
    %52 = vector.broadcast %51 : vector<1x1x1x128xf32> to vector<1x16x16x128xf32>
    %53 = arith.mulf %48, %52 : vector<1x16x16x128xf32>
    %54 = arith.addf %47, %53 : vector<1x16x16x128xf32>
    %c0_50 = arith.constant 0 : index
    %c4_51 = arith.constant 4 : index
    %c0_52 = arith.constant 0 : index
    %c0_53 = arith.constant 0 : index
    %55 = vector.load %arg5[%c0_50, %c4_51, %c0_52, %c0_53] : memref<1x20x20x128xf32, #tpu.memory_space<vmem>>, vector<1x16x16x128xf32>
    %56 = vector.extract_strided_slice %8 {offsets = [2, 0, 0], sizes = [1, 1, 128], strides = [1, 1, 1]} : vector<3x3x128xf32> to vector<1x1x128xf32>
    %57 = vector.shape_cast %56 : vector<1x1x128xf32> to vector<128xf32>
    %58 = vector.shape_cast %57 : vector<128xf32> to vector<1x1x1x128xf32>
    %59 = vector.broadcast %58 : vector<1x1x1x128xf32> to vector<1x16x16x128xf32>
    %60 = arith.mulf %55, %59 : vector<1x16x16x128xf32>
    %61 = arith.addf %54, %60 : vector<1x16x16x128xf32>
    %c0_54 = arith.constant 0 : index
    %c4_55 = arith.constant 4 : index
    %c2_56 = arith.constant 2 : index
    %c0_57 = arith.constant 0 : index
    %62 = vector.load %arg5[%c0_54, %c4_55, %c2_56, %c0_57] : memref<1x20x20x128xf32, #tpu.memory_space<vmem>>, vector<1x16x16x128xf32>
    %63 = vector.extract_strided_slice %8 {offsets = [2, 1, 0], sizes = [1, 1, 128], strides = [1, 1, 1]} : vector<3x3x128xf32> to vector<1x1x128xf32>
    %64 = vector.shape_cast %63 : vector<1x1x128xf32> to vector<128xf32>
    %65 = vector.shape_cast %64 : vector<128xf32> to vector<1x1x1x128xf32>
    %66 = vector.broadcast %65 : vector<1x1x1x128xf32> to vector<1x16x16x128xf32>
    %67 = arith.mulf %62, %66 : vector<1x16x16x128xf32>
    %68 = arith.addf %61, %67 : vector<1x16x16x128xf32>
    %c0_58 = arith.constant 0 : index
    %c4_59 = arith.constant 4 : index
    %c4_60 = arith.constant 4 : index
    %c0_61 = arith.constant 0 : index
    %69 = vector.load %arg5[%c0_58, %c4_59, %c4_60, %c0_61] : memref<1x20x20x128xf32, #tpu.memory_space<vmem>>, vector<1x16x16x128xf32>
    %70 = vector.extract_strided_slice %8 {offsets = [2, 2, 0], sizes = [1, 1, 128], strides = [1, 1, 1]} : vector<3x3x128xf32> to vector<1x1x128xf32>
    %71 = vector.shape_cast %70 : vector<1x1x128xf32> to vector<128xf32>
    %72 = vector.shape_cast %71 : vector<128xf32> to vector<1x1x1x128xf32>
    %73 = vector.broadcast %72 : vector<1x1x1x128xf32> to vector<1x16x16x128xf32>
    %74 = arith.mulf %69, %73 : vector<1x16x16x128xf32>
    %75 = arith.addf %68, %74 : vector<1x16x16x128xf32>
    %cst_62 = arith.constant 5.000000e-01 : f32
    %76 = vector.broadcast %cst_62 : f32 to vector<1x16x16x128xf32>
    %77 = arith.mulf %76, %75 : vector<1x16x16x128xf32>
    %cst_63 = arith.constant 4.471500e-02 : f32
    %78 = vector.broadcast %cst_63 : f32 to vector<1x16x16x128xf32>
    %79 = arith.mulf %78, %75 : vector<1x16x16x128xf32>
    %80 = arith.mulf %79, %75 : vector<1x16x16x128xf32>
    %81 = arith.mulf %80, %75 : vector<1x16x16x128xf32>
    %82 = arith.addf %75, %81 : vector<1x16x16x128xf32>
    %cst_64 = arith.constant 0.797884583 : f32
    %83 = vector.broadcast %cst_64 : f32 to vector<1x16x16x128xf32>
    %84 = arith.mulf %83, %82 : vector<1x16x16x128xf32>
    %85 = math.tanh %84 : vector<1x16x16x128xf32>
    %cst_65 = arith.constant 1.000000e+00 : f32
    %86 = vector.broadcast %cst_65 : f32 to vector<1x16x16x128xf32>
    %87 = arith.addf %86, %85 : vector<1x16x16x128xf32>
    %88 = arith.mulf %77, %87 : vector<1x16x16x128xf32>
    %c0_66 = arith.constant 0 : index
    %c0_67 = arith.constant 0 : index
    %c0_68 = arith.constant 0 : index
    %c0_69 = arith.constant 0 : index
    %89 = vector.load %arg1[%c0_66, %c0_67, %c0_68, %c0_69] : memref<1x16x16x128xf32, #tpu.memory_space<vmem>>, vector<1x16x16x128xf32>
    %90 = arith.addf %89, %88 : vector<1x16x16x128xf32>
    %c0_70 = arith.constant 0 : index
    %c0_71 = arith.constant 0 : index
    %c0_72 = arith.constant 0 : index
    %c0_73 = arith.constant 0 : index
    %91 = vector.load %arg4[%c0_70, %c0_71, %c0_72, %c0_73] : memref<1x16x16x128xf32, #tpu.memory_space<vmem>>, vector<1x16x16x128xf32>
    tpu.vector_store %arg4[%c0_70, %c0_71, %c0_72, %c0_73], %90 {strides = array<i32>} : memref<1x16x16x128xf32, #tpu.memory_space<vmem>>, vector<1x16x16x128xf32>,
    return
  }
  func.func @transform_0(%arg0: i32) -> (i32, i32, i32, i32) {
    %c0_i32 = arith.constant 0 : i32
    %c0_i32_0 = arith.constant 0 : i32
    %c0_i32_1 = arith.constant 0 : i32
    %c0_i32_2 = arith.constant 0 : i32
    return %arg0, %c0_i32, %c0_i32_0, %c0_i32_1 : i32, i32, i32, i32
  }
  func.func @transform_1(%arg0: i32) -> (i32, i32, i32) {
    %c0_i32 = arith.constant 0 : i32
    %c0_i32_0 = arith.constant 0 : i32
    %c0_i32_1 = arith.constant 0 : i32
    %c0_i32_2 = arith.constant 0 : i32
    return %c0_i32, %c0_i32_0, %c0_i32_1 : i32, i32, i32
  }
  func.func @transform_2(%arg0: i32) -> (i32, i32) {
    %c0_i32 = arith.constant 0 : i32
    %c0_i32_0 = arith.constant 0 : i32
    %c0_i32_1 = arith.constant 0 : i32
    return %c0_i32, %c0_i32_0 : i32, i32
  }
  func.func @transform_3(%arg0: i32) -> (i32, i32, i32, i32) {
    %c0_i32 = arith.constant 0 : i32
    %c0_i32_0 = arith.constant 0 : i32
    %c0_i32_1 = arith.constant 0 : i32
    %c0_i32_2 = arith.constant 0 : i32
    return %arg0, %c0_i32, %c0_i32_0, %c0_i32_1 : i32, i32, i32, i32
  }
}

</mosaic_0001>

<bundles_post_ra>
// kernel: tpu_custom_call.1
= control target key start
LH: loop header
LB: loop body
LE: loop exit
PB: predicated region body
PF: predicated region fallthrough
CT: control target
= control target key end

     0   :  { %8 = vsyncpa [#allocation4], 0  ;;  %s3525_s0 = inlined_call_operand.hbm [shape: f32[2,16,16,128], index: 0, kind: input, shape index: {}]   ;;  %s3526_s1 = inlined_call_operand.hbm [shape: f32[3,3,128], index: 1, kind: input, shape index: {}]   ;;  %s3527_s2 = inlined_call_operand.vmem [shape: f32[1,128], index: 2, kind: input, shape index: {}]   ;;  %s3528_s3 = inlined_call_operand.hbm [shape: f32[2,16,16,128], index: 3, kind: output, shape index: {}]  }
   0x1   :  { %10 = vsyncpa [#allocation4 + $0x1], 0 }
   0x2   :  { %11 = vsyncpa [#allocation7], 0 }
   0x3   :  { %12 = vsyncpa [#allocation5], 0 }
   0x4   :  { %14 = vsyncpa [#allocation5 + $0x1], 0  ;;  %s2030_s12 = smov 0   ;;  %s2032_s13 = smov 0  }
   0x5   :  { %s2034_s14 = smov 0   ;;  %s2036_s15 = smov 0  }
   0x6 LB: > { %s2051_s16 = sadd.s32 4294967295, %s1998_s15   ;;  %s1714_s17 = sadd.s32 4294967294, %s1998_s15   ;;  %s1998_s15 = sphi %s2036_s15, %s3779_s15   ;;  %s1994_s14 = sphi %s2034_s14, %s3778_s14   ;;  %s1990_s13 = sphi %s2032_s13, %s3777_s13   ;;  %s1986_s12 = sphi %s2030_s12, %s3776_s12  }
   0x7   : > { %p40_p0 = scmp.ne.s32.totalorder %s1990_s13, %s1986_s12  ;;  %p3529_p1 = scmp.eq.s32.totalorder %s2051_s16, 0 }
   0x8   : > { %p112_p3 = scmp.eq.s32.totalorder %s1714_s17, 1  ;;  %p1715_p5 = scmp.ge.s32.totalorder %s1998_s15, 1 }
   0x9   : > { %p2060_p4 = por %p3529_p1, %p40_p0  ;;  %p119_p7 = scmp.lt.s32.totalorder %s1998_s15, 3 }
   0xa   : > { %p2065_p6 = por %p112_p3, %p40_p0  ;;  %s2000_s21 = smov [#allocation6]  }
   0xb   : > { %s3574_s18 = scalar_select %p2060_p4, 1, 0 }
   0xc   : > { %s3575_s19 = scalar_select %p2065_p6, 1, 0 }
   0xd   : > { %p2070_p8 = pnand %p1715_p5, %p119_p7  ;;  %s131_s22 = sshll.u32 %s2000_s21, 4  ;;  %s132_s22 = int_to_ptr.vmem [resolvable:$true] %s131_s22 }
   0xe   : > { %s2084_s24 = sadd.s32 1, %s1998_s15   ;;  %s27_s25 = sadd.s32 1, %s1994_s14 }
   0xf   : > { %s3576_s20 = scalar_select %p2070_p8, 1, 0 }
  0x10   : > { %p1741_p9 = pneg %p2070_p8  ;;  %s24_s26 = ssub.s32 %s1998_s15, %s2084_s24 }
  0x11   : > { %s1887_s27 = scalar_lea.vmem %s132_s22, 192  ;;  %p1895_p5 = scmp.lt.s32.totalorder %s132_s22, %s132_s22 }
  0x12   : > { %p2079_p11 = pnand %p1741_p9, %p3529_p1  ;;  %p1888_p13 = scmp.ne.s32.totalorder %s132_s22, %s1887_s27 }
  0x13   : > { %p1896_p7 = scmp.lt.s32.totalorder %s1887_s27, %s1887_s27 }
  0x14   : > { %p1878_p12 = pneg %p2079_p11 }
  0x15   : > { %p1897_p10 = por %p1896_p7, %p1895_p5 }
  0x16   : > { %p1890_p0 = pnand %p1888_p13, %p1878_p12 }
  0x18   : > { %p1891_p3 = pneg %p1890_p0 }
  0x1a   : > { %p1898_p2 = pnand %p1897_p10, %p1891_p3 }
  0x1c   : > { %1901 = shalt.err (!%p1898_p2)
}
  0x1d   : > { %s2001_s28 = smov 64   ;;  %s2002_s29 = smov 4  }
  0x1e   : > { %1744 = dma.hbm_to_vmem [thread:$0]  (!%p2079_p11), %s3526_s1, 192, %s132_s22, [#allocation7], %s2001_s28, %s2001_s28, %s2002_s29  }
  0x1f   : > { %p25_p9 = scmp.eq.s32.totalorder %s24_s26, 0  ;;  %p34_p12 = scmp.ne.s32.totalorder %s1994_s14, %s1990_s13 }
  0x20   : > { %p35_p10 = scmp.eq.s32.totalorder %s1998_s15, 0  ;;  %p1754_p2 = scmp.lt.s32.totalorder %s1998_s15, 2 }
  0x21   : > { %s2101_s5 = scalar_select %p25_p9, %s1994_s14, %s27_s25  }
  0x22   : > { %p36_p13 = por %p35_p10, %p34_p12  ;;  %p3578_p0 = scmp.eq.s32.totalorder %s2051_s16, 1 }
  0x23   : > { %s148_s7 = sand.u32 1, %s1994_s14   ;;  %s1731_s8 = sshll.u32 %s1998_s15, 12 }
  0x24   : > { %p2105_p3 = por %p3578_p0, %p34_p12  ;;  %s1718_s9 = sshll.u32 %s148_s7, 8 }
  0x25   : > { %s2114_s17 = scalar_lea.hbm %s3525_s0, %s1731_s8  ;;  %s152_s21 = scalar_lea.vmem [#allocation3], %s1718_s9 }
  0x26   : > { %s3579_s6 = scalar_select %p2105_p3, 1, 0 }
  0x27   : > { %s159_s22 = sshll.u32 %s152_s21, 4  ;;  %p2116_p11 = pnand %p1754_p2, %p36_p13  ;;  %s2120_s22 = int_to_ptr.vmem [resolvable:$true] %s159_s22 }
  0x28   : > { %s2122_s25 = scalar_lea.sflag [#allocation4], %s148_s7  ;;  %s1902_s26 = scalar_lea.hbm %s2114_s17, 4096 }
  0x29   : > { %p1903_p5 = scmp.ne.s32.totalorder %s2114_s17, %s1902_s26  ;;  %p1904_p7 = pneg %p2116_p11 }
  0x2a   : > { %s1907_s29 = scalar_lea.hbm %s3525_s0, 8192  ;;  %p1908_p10 = scmp.lt.s32.totalorder %s2114_s17, %s3525_s0 }
  0x2b   : > { %p1905_p9 = pnand %p1904_p7, %p1903_p5  ;;  %p1909_p2 = scmp.lt.s32.totalorder %s1907_s29, %s1902_s26 }
  0x2d   : > { %p1906_p12 = pneg %p1905_p9  ;;  %p1910_p13 = por %p1909_p2, %p1908_p10 }
  0x2f   : > { %p1911_p0 = pnand %p1910_p13, %p1906_p12 }
  0x31   : > { %1914 = shalt.err (!%p1911_p0)
}
  0x32   : > { %s1915_s7 = scalar_lea.vmem %s2120_s22, 4096  ;;  %s2003_s8 = smov [#allocation3]  }
  0x33   : > { %p1916_p1 = scmp.ne.s32.totalorder %s2120_s22, %s1915_s7  ;;  %s1920_s9 = sshll.u32 %s2003_s8, 4  ;;  %s1921_s9 = int_to_ptr.vmem [resolvable:$false] %s1920_s9 }
  0x34   : > { %s1922_s10 = scalar_lea.vmem %s1921_s9, 8192  ;;  %p1923_p9 = scmp.lt.s32.totalorder %s2120_s22, %s1921_s9 }
  0x35   : > { %p1918_p6 = pnand %p1916_p1, %p1904_p7  ;;  %p1924_p3 = scmp.lt.s32.totalorder %s1922_s10, %s1915_s7 }
  0x37   : > { %p1919_p5 = pneg %p1918_p6  ;;  %p1925_p4 = por %p1924_p3, %p1923_p9 }
  0x39   : > { %p1926_p8 = pnand %p1925_p4, %p1919_p5 }
  0x3b   : > { %1929 = shalt.err (!%p1926_p8)
}
  0x3c   : > { %s2004_s11 = smov 128   ;;  %s2005_s21 = smov 8  }
  0x3d   : > { %1748 = dma.hbm_to_vmem [thread:$0]  (!%p2116_p11), %s2114_s17, 4096, %s2120_s22, %s2122_s25, %s2004_s11, %s2004_s11, %s2005_s21  }
  0x3e   : > { %p3581_p1 = scmp.ne.s32.totalorder %s3576_s20, 0 }
  0x40   : > { %171 = sbr.rel (%p3581_p1) target bundleno = 399 (0x18f), region = 32 }
  0x45   : > { %s2146_s26 = sand.u32 1, %s1990_s13   ;;  %p3582_p4 = scmp.ne.s32.totalorder %s3574_s18, 0 }
  0x46   : > { %s1722_s27 = sshll.u32 %s2146_s26, 8  ;;  %s174_s28 = scalar_lea.sflag [#allocation4], %s2146_s26 }
  0x47   : > { %s2152_s29 = scalar_lea.vmem [#allocation3], %s1722_s27 }
  0x48   : > { %1973 = dma.done.wait (%p3582_p4), %s174_s28, 4096  }
  0x49   : > { %1975 = vsyncadd (%p3582_p4), %s174_s28, 4294963200  ;;  %p3583_p6 = scmp.eq.s32.totalorder %s2051_s16, 0 }
  0x4b   : > { %1977 = dma.done.wait (%p3583_p6), [#allocation7], 192   ;;  %p3584_p8 = pmov %p3583_p6 }
  0x4c   : > { %v357_v0 = vlaneseq  ;;  %v2006_v1 = vmov 0.0   ;;  %v322_v6 = vld [vmem:[#allocation6] sm:$0x7]  ;;  %v2190_v25 = vld [vmem:[%s2152_s29 + $0x8] sm:$0xff]  ;;  %v2193_v26 = vld [vmem:[%s2152_s29 + $0x10] sm:$0xff]  ;;  %s2863_s17 = scalar_lea.vmem [#allocation8], %s1722_s27 }
  0x4d   : > { %1979 = vsyncadd (%p3584_p8), [#allocation7], 4294967104  ;;  %204 = vst [vmem:[#allocation2] sm:$0xff] %v2006_v1  ;;  %v2169_v7 = vld [vmem:[%s2152_s29] sm:$0xff]  ;;  %v2204_v29 = vld [vmem:[%s2152_s29 + $0x18] sm:$0xff]  ;;  %s1732_s22 = sshll.u32 %s2051_s16, 12 }
  0x4e   : > { %205 = vst [vmem:[#allocation2 + $0x8] sm:$0xff] %v2006_v1  ;;  %206 = vst [vmem:[#allocation2 + $0x10] sm:$0xf] %v2006_v1  ;;  %v358_v2 = vshrl.u32 %v357_v0, 7  ;;  %v2174_v8 = vld [vmem:[%s3527_s2] ss:$0 sm:$0xff]  ;;  %s3479_s4 = scalar_lea.hbm %s3528_s3, %s1732_s22 }
  0x4f   : > { %207 = vst [vmem:[#allocation2 + $0x18] sm:$0xff] %v2006_v1  ;;  %208 = vst [vmem:[#allocation2 + $0x20] sm:$0xff] %v2006_v1  ;;  %v2207_v30 = vld [vmem:[%s2152_s29 + $0x20] sm:$0xff]  ;;  %v2210_v31 = vld [vmem:[%s2152_s29 + $0x28] sm:$0xff]  ;;  %s1631_s23 = sshll.u32 %s2863_s17, 4  ;;  %s1618_s7 = scalar_lea.sflag [#allocation5], %s2146_s26  ;;  %s3481_s23 = int_to_ptr.vmem [resolvable:$true] %s1631_s23 }
  0x50   : > { %209 = vst [vmem:[#allocation2 + $0x28] sm:$0xf] %v2006_v1  ;;  %211 = vst [vmem:[#allocation2 + $0x1b0] sm:$0xff] %v2006_v1  ;;  %v2162_v3 = vsub.s32 0, %v358_v2  ;;  %v2164_v4 = vsub.s32 1, %v358_v2  ;;  %v2166_v5 = vsub.s32 2, %v358_v2 }
  0x51   : > { %212 = vst [vmem:[#allocation2 + $0x1b8] sm:$0xff] %v2006_v1  ;;  %213 = vst [vmem:[#allocation2 + $0x1c0] sm:$0xf] %v2006_v1  ;;  %v2228_v36 = vld [vmem:[%s2152_s29 + $0x30] sm:$0xff]  ;;  %v2231_v37 = vld [vmem:[%s2152_s29 + $0x38] sm:$0xff]  ;;  %s1930_s8 = scalar_lea.vmem %s3481_s23, 4096 }
  0x52   : > { %214 = vst [vmem:[#allocation2 + $0x1c8] sm:$0xff] %v2006_v1  ;;  %215 = vst [vmem:[#allocation2 + $0x1d0] sm:$0xff] %v2006_v1  ;;  %v2177_v12 = vrot.slane %v322_v6, %v2162_v3  ;;  %v2180_v13 = vrot.slane %v322_v6, %v2164_v4  ;;  %v2184_v17 = vrot.slane %v322_v6, %v2166_v5  ;;  %v2234_v38 = vld [vmem:[%s2152_s29 + $0x40] sm:$0xff]  ;;  %v2252_v43 = vld [vmem:[%s2152_s29 + $0x48] sm:$0xff]  ;;  %p1931_p3 = scmp.ne.s32.totalorder %s3481_s23, %s1930_s8  ;;  %p3773_p11 = scmp.ne.s32.totalorder %s3579_s6, 0 }
  0x53   : > { %216 = vst [vmem:[#allocation2 + $0x1d8] sm:$0xf] %v2006_v1  ;;  %219 = vst [vmem:[#allocation2 + $0x30] sm:$0x3] %v2006_v1  ;;  %v2255_v44 = vld [vmem:[%s2152_s29 + $0x50] sm:$0xff]  ;;  %v2258_v45 = vld [vmem:[%s2152_s29 + $0x58] sm:$0xff] }
  0x54   : > { %220 = vst [vmem:[#allocation2 + $0x48] sm:$0x3] %v2006_v1  ;;  %221 = vst [vmem:[#allocation2 + $0x60] sm:$0x3] %v2006_v1  ;;  %v362_v21 = vmul.f32 0.0, %v2177_v12  ;;  %v2267_v48 = vmul.f32 %v2180_v13, %v2169_v7  ;;  %v2271_v49 = vmul.f32 %v2180_v13, %v2190_v25  ;;  %v2275_v50 = vmul.f32 %v2180_v13, %v2193_v26  ;;  %v2281_v51 = vld [vmem:[%s2152_s29 + $0x60] sm:$0xff]  ;;  %p1932_p7 = pnand %p1931_p3, %p3773_p11 }
  0x55   : > { %222 = vst [vmem:[#allocation2 + $0x78] sm:$0x3] %v2006_v1  ;;  %223 = vst [vmem:[#allocation2 + $0x90] sm:$0x3] %v2006_v1  ;;  %v432_v9 = vld [vmem:[#allocation2 + $0x2] sm:$0xff]  ;;  %v433_v10 = vld [vmem:[#allocation2 + $0xa] sm:$0xff]  ;;  %v2288_v53 = vmul.f32 %v2180_v13, %v2204_v29  ;;  %v2292_v54 = vmul.f32 %v2180_v13, %v2207_v30  ;;  %v2296_v55 = vmul.f32 %v2180_v13, %v2255_v44 }
  0x56   : > { %224 = vst [vmem:[#allocation2 + $0xa8] sm:$0x3] %v2006_v1  ;;  %225 = vst [vmem:[#allocation2 + $0xc0] sm:$0x3] %v2006_v1  ;;  %v434_v11 = vld [vmem:[#allocation2 + $0x1a] sm:$0xff]  ;;  %v532_v16 = vld [vmem:[#allocation2 + $0x4] sm:$0xff]  ;;  %v2196_v27 = vmul.f32 %v2180_v13, %v432_v9  ;;  %v2199_v28 = vmul.f32 %v2180_v13, %v433_v10  ;;  %v2237_v39 = vadd.f32 %v2174_v8, %v362_v21  ;;  %p1933_p12 = pneg %p1932_p7 }
  0x57   : > { %226 = vst [vmem:[#allocation2 + $0xd8] sm:$0x3] %v2006_v1  ;;  %227 = vst [vmem:[#allocation2 + $0xf0] sm:$0x3] %v2006_v1  ;;  %v435_v15 = vld [vmem:[#allocation2 + $0x22] sm:$0xff]  ;;  %v2216_v33 = vmul.f32 %v2180_v13, %v434_v11  ;;  %v2222_v35 = vmul.f32 %v2184_v17, %v532_v16  ;;  %v2300_v56 = vmul.f32 %v2180_v13, %v2258_v45  ;;  %v2305_v57 = vld [vmem:[%s2152_s29 + $0x70] sm:$0xff] }
  0x58   : > { %228 = vst [vmem:[#allocation2 + $0x108] sm:$0x3] %v2006_v1  ;;  %229 = vst [vmem:[#allocation2 + $0x120] sm:$0x3] %v2006_v1  ;;  %v534_v18 = vld [vmem:[#allocation2 + $0x1c] sm:$0xff]  ;;  %v2219_v34 = vmul.f32 %v2180_v13, %v435_v15  ;;  %v2284_v52 = vld [vmem:[%s2152_s29 + $0x68] sm:$0xff]  ;;  %v2313_v60 = vmul.f32 %v2180_v13, %v2210_v31  ;;  %v2317_v61 = vmul.f32 %v2180_v13, %v2228_v36 }
  0x59   : > { %230 = vst [vmem:[#allocation2 + $0x138] sm:$0x3] %v2006_v1  ;;  %231 = vst [vmem:[#allocation2 + $0x150] sm:$0x3] %v2006_v1  ;;  %v2246_v42 = vmul.f32 %v2184_v17, %v534_v18  ;;  %v2308_v58 = vld [vmem:[%s2152_s29 + $0x78] sm:$0xff]  ;;  %v273_v59 = vld [vmem:[%s2152_s29 + $0x80] sm:$0xff]  ;;  %v2321_v62 = vmul.f32 %v2180_v13, %v2231_v37 }
  0x5a   : > { %232 = vst [vmem:[#allocation2 + $0x168] sm:$0x3] %v2006_v1  ;;  %233 = vst [vmem:[#allocation2 + $0x180] sm:$0x3] %v2006_v1  ;;  %v2326_v63 = vmul.f32 %v2180_v13, %v273_v59  ;;  %v274_v0 = vld [vmem:[%s2152_s29 + $0x88] sm:$0xff]  ;;  %v276_v2 = vld [vmem:[%s2152_s29 + $0x98] sm:$0xff] }
  0x5b   : > { %234 = vst [vmem:[#allocation2 + $0x198] sm:$0x3] %v2006_v1  ;;  %239 = vst [vmem:[#allocation2 + $0x42] sm:$0x3] %v2006_v1  ;;  %v2334_v9 = vmul.f32 %v2180_v13, %v274_v0  ;;  %v2340_v11 = vmul.f32 %v2180_v13, %v276_v2  ;;  %v278_v15 = vld [vmem:[%s2152_s29 + $0xa8] sm:$0xff]  ;;  %v279_v16 = vld [vmem:[%s2152_s29 + $0xb0] sm:$0xff] }
  0x5c   : > { %240 = vst [vmem:[#allocation2 + $0x5a] sm:$0x3] %v2006_v1  ;;  %241 = vst [vmem:[#allocation2 + $0x72] sm:$0x3] %v2006_v1  ;;  %s2007_s16 = smov [#allocation8]  }
  0x5d   : > { %242 = vst [vmem:[#allocation2 + $0x8a] sm:$0x3] %v2006_v1  ;;  %243 = vst [vmem:[#allocation2 + $0xa2] sm:$0x3] %v2006_v1  ;;  %s1934_s9 = sshll.u32 %s2007_s16, 4  ;;  %s1935_s9 = int_to_ptr.vmem [resolvable:$false] %s1934_s9 }
  0x5e   : > { %244 = vst [vmem:[#allocation2 + $0xba] sm:$0x3] %v2006_v1  ;;  %245 = vst [vmem:[#allocation2 + $0xd2] sm:$0x3] %v2006_v1  ;;  %s1936_s10 = scalar_lea.vmem %s1935_s9, 8192  ;;  %p1937_p10 = scmp.lt.s32.totalorder %s3481_s23, %s1935_s9 }
  0x5f   : > { %246 = vst [vmem:[#allocation2 + $0xea] sm:$0x3] %v2006_v1  ;;  %247 = vst [vmem:[#allocation2 + $0x102] sm:$0x3] %v2006_v1  ;;  %p1938_p2 = scmp.lt.s32.totalorder %s1936_s10, %s1930_s8 }
  0x60   : > { %248 = vst [vmem:[#allocation2 + $0x11a] sm:$0x3] %v2006_v1  ;;  %249 = vst [vmem:[#allocation2 + $0x132] sm:$0x3] %v2006_v1 }
  0x61   : > { %250 = vst [vmem:[#allocation2 + $0x14a] sm:$0x3] %v2006_v1  ;;  %251 = vst [vmem:[#allocation2 + $0x162] sm:$0x3] %v2006_v1  ;;  %p1939_p13 = por %p1938_p2, %p1937_p10 }
  0x62   : > { %252 = vst [vmem:[#allocation2 + $0x17a] sm:$0x3] %v2006_v1  ;;  %253 = vst [vmem:[#allocation2 + $0x192] sm:$0x3] %v2006_v1 }
  0x63   : > { %254 = vst [vmem:[#allocation2 + $0x1aa] sm:$0x3] %v2006_v1  ;;  %217 = vst [vmem:[#allocation2] sm:$0x3] %v2006_v1  ;;  %p1940_p0 = pnand %p1939_p13, %p1933_p12 }
  0x64   : > { %218 = vst [vmem:[#allocation2 + $0x18] sm:$0x3] %v2006_v1  ;;  %235 = vst [vmem:[#allocation2 + $0x1b0] sm:$0x3] %v2006_v1 }
  0x65   : > { %236 = vst [vmem:[#allocation2 + $0x1c8] sm:$0x3] %v2006_v1  ;;  %237 = vst [vmem:[#allocation2 + $0x12] sm:$0x3] %v2006_v1 }
  0x66   : > { %238 = vst [vmem:[#allocation2 + $0x2a] sm:$0x3] %v2006_v1  ;;  %255 = vst [vmem:[#allocation2 + $0x1c2] sm:$0x3] %v2006_v1 }
  0x67   : > { %256 = vst [vmem:[#allocation2 + $0x1da] sm:$0x3] %v2006_v1  ;;  %290 = vst [vmem:[#allocation2 + $0x32] sm:$0xff] %v2169_v7  ;;  %v275_v1 = vld [vmem:[%s2152_s29 + $0x90] sm:$0xff] }
  0x68   : > { %291 = vst [vmem:[#allocation2 + $0x3a] sm:$0xff] %v2190_v25  ;;  %292 = vst [vmem:[#allocation2 + $0x4a] sm:$0xff] %v2193_v26  ;;  %v2337_v10 = vmul.f32 %v2180_v13, %v275_v1 }
  0x69   : > { %293 = vst [vmem:[#allocation2 + $0x52] sm:$0xff] %v2204_v29  ;;  %294 = vst [vmem:[#allocation2 + $0x62] sm:$0xff] %v2207_v30 }
  0x6a   : > { %v325_v14 = vld [vmem:[#allocation2] sm:$0xff]  ;;  %295 = vst [vmem:[#allocation2 + $0x6a] sm:$0xff] %v2210_v31  ;;  %3585 = vst [vmem:[#allocation12_spill] sm:$0xff] %v2231_v37 }
  0x6b   : > { %v327_v19 = vld [vmem:[#allocation2 + $0x18] sm:$0xff]  ;;  %v361_v20 = vmul.f32 %v2177_v12, %v325_v14  ;;  %3586 = vst [vmem:[#allocation13_spill] sm:$0xff] %v2234_v38  ;;  %296 = vst [vmem:[#allocation2 + $0x7a] sm:$0xff] %v2228_v36  ;;  %v277_v14 = vld [vmem:[%s2152_s29 + $0xa0] sm:$0xff] }
  0x6c   : > { %v533_v22 = vld [vmem:[#allocation2 + $0xc] sm:$0xff]  ;;  %v363_v23 = vmul.f32 %v2177_v12, %v327_v19  ;;  %297 = vst [vmem:[#allocation2 + $0x82] sm:$0xff] %v2231_v37  ;;  %298 = vst [vmem:[#allocation2 + $0x92] sm:$0xff] %v2234_v38  ;;  %v2352_v21 = vmul.f32 %v2180_v13, %v277_v14 }
  0x6d   : > { %v535_v24 = vld [vmem:[#allocation2 + $0x24] sm:$0xff]  ;;  %v2213_v32 = vadd.f32 %v2174_v8, %v361_v20  ;;  %v2243_v41 = vmul.f32 %v2184_v17, %v533_v22  ;;  %3587 = vst [vmem:[#allocation14_spill] sm:$0xff] %v2252_v43  ;;  %3588 = vst [vmem:[#allocation15_spill] sm:$0xff] %v2255_v44  ;;  %v2355_v22 = vmul.f32 %v2180_v13, %v278_v15 }
  0x6e   : > { %v2240_v40 = vadd.f32 %v2174_v8, %v363_v23  ;;  %3589 = vst [vmem:[#allocation16_spill] sm:$0xff] %v2258_v45  ;;  %v2261_v46 = vmul.f32 %v2184_v17, %v535_v24  ;;  %v2263_v47 = vld [vmem:[#allocation2 + $0x30] sm:$0xff]  ;;  %3590 = vst [vmem:[#allocation17_spill] sm:$0xff] %v2271_v49  ;;  %v2358_v23 = vmul.f32 %v2180_v13, %v279_v16  ;;  %v286_v37 = vld [vmem:[%s2152_s29 + $0xe8] sm:$0xff] }
  0x6f   : > { %3591 = vst [vmem:[#allocation18_spill] sm:$0xff] %v2275_v50  ;;  %299 = vst [vmem:[#allocation2 + $0x9a] sm:$0xff] %v2252_v43  ;;  %v365_v6 = vmul.f32 %v2177_v12, %v2263_v47  ;;  %v2345_v18 = vld [vmem:[#allocation2 + $0x38] sm:$0xff]  ;;  %v500_v24 = vadd.f32 %v2196_v27, %v2213_v32  ;;  %v2380_v27 = vmul.f32 %v2180_v13, %v2281_v51 }
  0x70   : > { %300 = vst [vmem:[#allocation2 + $0xaa] sm:$0xff] %v2255_v44  ;;  %301 = vst [vmem:[#allocation2 + $0xb2] sm:$0xff] %v2258_v45  ;;  %v2347_v19 = vld [vmem:[#allocation2 + $0x34] sm:$0xff]  ;;  %v2349_v20 = vld [vmem:[#allocation2 + $0x3c] sm:$0xff] }
  0x71   : > { %3592 = vst [vmem:[#allocation19_spill] sm:$0xff] %v2281_v51  ;;  %3593 = vst [vmem:[#allocation20_spill] sm:$0xff] %v2284_v52 }
  0x72   : > { %3594 = vst [vmem:[#allocation21_spill] sm:$0xff] %v2288_v53  ;;  %3595 = vst [vmem:[#allocation22_spill] sm:$0xff] %v2292_v54 }
  0x73   : > { %3596 = vst [vmem:[#allocation23_spill] sm:$0xff] %v2296_v55  ;;  %3597 = vst [vmem:[#allocation24_spill] sm:$0xff] %v2300_v56  ;;  %v2409_v56 = vld [vmem:[#allocation2 + $0x78] sm:$0xff]  ;;  %v2413_v55 = vmul.f32 %v2180_v13, %v2308_v58 }
  0x74   : > { %302 = vst [vmem:[#allocation2 + $0xc2] sm:$0xff] %v2281_v51  ;;  %303 = vst [vmem:[#allocation2 + $0xca] sm:$0xff] %v2284_v52  ;;  %v2448_v51 = vld [vmem:[#allocation2 + $0x90] sm:$0xff] }
  0x75   : > { %3598 = vst [vmem:[#allocation25_spill] sm:$0xff] %v2305_v57  ;;  %3599 = vst [vmem:[#allocation26_spill] sm:$0xff] %v2308_v58 }
  0x76   : > { %3600 = vst [vmem:[#allocation27_spill] sm:$0xff] %v2313_v60  ;;  %3601 = vst [vmem:[#allocation28_spill] sm:$0xff] %v2317_v61 }
  0x77   : > { %3602 = vst [vmem:[#allocation29_spill] sm:$0xff] %v2321_v62  ;;  %304 = vst [vmem:[#allocation2 + $0xda] sm:$0xff] %v2305_v57  ;;  %v2463_v45 = vld [vmem:[#allocation2 + $0xa8] sm:$0xff]  ;;  %v2465_v54 = vld [vmem:[#allocation2 + $0xb0] sm:$0xff] }
  0x78   : > { %305 = vst [vmem:[#allocation2 + $0xe2] sm:$0xff] %v2308_v58  ;;  %306 = vst [vmem:[#allocation2 + $0xf2] sm:$0xff] %v273_v59  ;;  %v366_v59 = vmul.f32 %v2177_v12, %v2345_v18  ;;  %v2532_v49 = vld [vmem:[#allocation2 + $0xb4] sm:$0xff] }
  0x79   : > { %3603 = vst [vmem:[#allocation30_spill] sm:$0xff] %v2326_v63  ;;  %307 = vst [vmem:[#allocation2 + $0xfa] sm:$0xff] %v274_v0  ;;  %v2364_v0 = vld [vmem:[#allocation2 + $0x48] sm:$0xff]  ;;  %v2405_v63 = vmul.f32 %v2184_v17, %v2347_v19 }
  0x7a   : > { %3604 = vst [vmem:[#allocation31_spill] sm:$0xff] %v2334_v9  ;;  %308 = vst [vmem:[#allocation2 + $0x10a] sm:$0xff] %v275_v1  ;;  %v2366_v1 = vld [vmem:[#allocation2 + $0x50] sm:$0xff]  ;;  %v367_v32 = vmul.f32 %v2177_v12, %v2364_v0  ;;  %v2401_v9 = vadd.f32 %v2174_v8, %v365_v6  ;;  %v2437_v58 = vadd.f32 %v2174_v8, %v366_v59  ;;  %v2457_v59 = vld [vmem:[#allocation2 + $0x7c] sm:$0xff] }
  0x7b   : > { %3605 = vst [vmem:[#allocation32_spill] sm:$0xff] %v2337_v10  ;;  %309 = vst [vmem:[#allocation2 + $0x112] sm:$0xff] %v276_v2  ;;  %v2368_v2 = vld [vmem:[#allocation2 + $0x4c] sm:$0xff]  ;;  %v2398_v10 = vmul.f32 %v2180_v13, %v2305_v57  ;;  %v2430_v57 = vadd.f32 %v2222_v35, %v500_v24  ;;  %v2450_v35 = vld [vmem:[#allocation2 + $0x98] sm:$0xff]  ;;  %v371_v24 = vmul.f32 %v2177_v12, %v2409_v56 }
  0x7c   : > { %3606 = vst [vmem:[#allocation33_spill] sm:$0xff] %v2340_v11  ;;  %310 = vst [vmem:[#allocation2 + $0x122] sm:$0xff] %v277_v14  ;;  %v2372_v14 = vmul.f32 %v2180_v13, %v2234_v38  ;;  %v2394_v11 = vmul.f32 %v2180_v13, %v2284_v52  ;;  %v2421_v6 = vmul.f32 %v2184_v17, %v2368_v2  ;;  %v282_v38 = vld [vmem:[%s2152_s29 + $0xc8] sm:$0xff] }
  0x7d   : > { %3607 = vst [vmem:[#allocation34_spill] sm:$0xff] %v2352_v21  ;;  %311 = vst [vmem:[#allocation2 + $0x12a] sm:$0xff] %v278_v15  ;;  %v2376_v15 = vmul.f32 %v2180_v13, %v2252_v43  ;;  %v2390_v21 = vld [vmem:[#allocation2 + $0x68] sm:$0xff]  ;;  %v2440_v62 = vadd.f32 %v2174_v8, %v367_v32  ;;  %v373_v32 = vmul.f32 %v2177_v12, %v2448_v51 }
  0x7e   : > { %3608 = vst [vmem:[#allocation35_spill] sm:$0xff] %v2355_v22  ;;  %312 = vst [vmem:[#allocation2 + $0x13a] sm:$0xff] %v279_v16  ;;  %v368_v16 = vmul.f32 %v2177_v12, %v2366_v1  ;;  %v2388_v22 = vld [vmem:[#allocation2 + $0x60] sm:$0xff]  ;;  %v370_v52 = vmul.f32 %v2177_v12, %v2390_v21  ;;  %v374_v60 = vmul.f32 %v2177_v12, %v2450_v35 }
  0x7f   : > { %3609 = vst [vmem:[#allocation36_spill] sm:$0xff] %v2358_v23  ;;  %3610 = vst [vmem:[#allocation37_spill] sm:$0xff] %v2372_v14  ;;  %v2386_v23 = vld [vmem:[#allocation2 + $0x54] sm:$0xff]  ;;  %v2427_v14 = vld [vmem:[#allocation2 + $0x80] sm:$0xff]  ;;  %v2485_v50 = vadd.f32 %v2174_v8, %v373_v32  ;;  %v2503_v32 = vmul.f32 %v2184_v17, %v2457_v59 }
  0x80   : > { %3611 = vst [vmem:[#allocation38_spill] sm:$0xff] %v2376_v15  ;;  %3612 = vst [vmem:[#allocation39_spill] sm:$0xff] %v2380_v27  ;;  %v369_v27 = vmul.f32 %v2177_v12, %v2388_v22  ;;  %v2425_v15 = vld [vmem:[#allocation2 + $0x6c] sm:$0xff]  ;;  %v2444_v61 = vmul.f32 %v2184_v17, %v2386_v23  ;;  %v372_v53 = vmul.f32 %v2177_v12, %v2427_v14 }
  0x81   : > { %3613 = vst [vmem:[#allocation40_spill] sm:$0xff] %v2394_v11  ;;  %3614 = vst [vmem:[#allocation41_spill] sm:$0xff] %v2398_v10  ;;  %v2417_v11 = vmul.f32 %v2184_v17, %v2349_v20  ;;  %v2423_v10 = vld [vmem:[#allocation2 + $0x64] sm:$0xff]  ;;  %v2499_v43 = vadd.f32 %v2174_v8, %v370_v52 }
  0x82   : > { %3615 = vst [vmem:[#allocation42_spill] sm:$0xff] %v2413_v55  ;;  %3617 = vst [vmem:[#allocation44_spill] sm:$0xff] %v2421_v6  ;;  %v2434_v55 = vadd.f32 %v2199_v28, %v2237_v39  ;;  %v2453_v28 = vadd.f32 %v2174_v8, %v368_v16  ;;  %v2468_v44 = vadd.f32 %v2174_v8, %v369_v27  ;;  %v2482_v6 = vld [vmem:[#allocation2 + $0xc0] sm:$0xff] }
  0x83   : > { %3616 = vst [vmem:[#allocation43_spill] sm:$0xff] %v2417_v11  ;;  %3618 = vst [vmem:[#allocation45_spill] sm:$0xff] %v2437_v58  ;;  %v2472_v16 = vmul.f32 %v2184_v17, %v2423_v10  ;;  %v2488_v27 = vadd.f32 %v2174_v8, %v374_v60  ;;  %v377_v60 = vmul.f32 %v2177_v12, %v2482_v6  ;;  %v346_v11 = vld [vmem:[#allocation2 + $0xf8] sm:$0xff]  ;;  %v281_v58 = vld [vmem:[%s2152_s29 + $0xc0] sm:$0xff] }
  0x84   : > { %3619 = vst [vmem:[#allocation46_spill] sm:$0xff] %v2440_v62  ;;  %3620 = vst [vmem:[#allocation47_spill] sm:$0xff] %v2444_v61  ;;  %v2476_v61 = vmul.f32 %v2184_v17, %v2425_v15  ;;  %v2496_v62 = vld [vmem:[#allocation2 + $0xc8] sm:$0xff] }
  0x85   : > { %3621 = vst [vmem:[#allocation48_spill] sm:$0xff] %v2448_v51  ;;  %3622 = vst [vmem:[#allocation49_spill] sm:$0xff] %v2450_v35  ;;  %v2516_v35 = vadd.f32 %v2174_v8, %v371_v24  ;;  %v2535_v24 = vadd.f32 %v2174_v8, %v377_v60  ;;  %v2553_v60 = vld [vmem:[#allocation2 + $0xcc] sm:$0xff] }
  0x86   : > { %3623 = vst [vmem:[#allocation50_spill] sm:$0xff] %v2453_v28  ;;  %3624 = vst [vmem:[#allocation51_spill] sm:$0xff] %v2463_v45  ;;  %v2480_v28 = vld [vmem:[#allocation2 + $0x84] sm:$0xff]  ;;  %v283_v51 = vld [vmem:[%s2152_s29 + $0xd0] sm:$0xff] }
  0x87   : > { %3625 = vst [vmem:[#allocation52_spill] sm:$0xff] %v2465_v54  ;;  %3626 = vst [vmem:[#allocation53_spill] sm:$0xff] %v2468_v44  ;;  %v2490_v44 = vld [vmem:[#allocation2 + $0x94] sm:$0xff]  ;;  %v2520_v52 = vmul.f32 %v2184_v17, %v2480_v28 }
  0x88   : > { %3627 = vst [vmem:[#allocation54_spill] sm:$0xff] %v2472_v16  ;;  %3628 = vst [vmem:[#allocation55_spill] sm:$0xff] %v2476_v61  ;;  %v375_v16 = vmul.f32 %v2177_v12, %v2463_v45  ;;  %v376_v61 = vmul.f32 %v2177_v12, %v2465_v54  ;;  %v2511_v45 = vld [vmem:[#allocation2 + $0xd8] sm:$0xff]  ;;  %v2513_v54 = vld [vmem:[#allocation2 + $0xe0] sm:$0xff] }
  0x89   : > { %3629 = vst [vmem:[#allocation56_spill] sm:$0xff] %v2480_v28  ;;  %3630 = vst [vmem:[#allocation57_spill] sm:$0xff] %v2482_v6  ;;  %v2528_v6 = vld [vmem:[#allocation2 + $0xac] sm:$0xff]  ;;  %v2551_v28 = vld [vmem:[#allocation2 + $0xc4] sm:$0xff] }
  0x8a   : > { %3631 = vst [vmem:[#allocation58_spill] sm:$0xff] %v2485_v50  ;;  %3632 = vst [vmem:[#allocation59_spill] sm:$0xff] %v2488_v27  ;;  %v2505_v50 = vld [vmem:[#allocation2 + $0x9c] sm:$0xff]  ;;  %v378_v27 = vmul.f32 %v2177_v12, %v2496_v62 }
  0x8b   : > { %3633 = vst [vmem:[#allocation60_spill] sm:$0xff] %v2490_v44  ;;  %3634 = vst [vmem:[#allocation61_spill] sm:$0xff] %v2496_v62  ;;  %v2530_v62 = vld [vmem:[#allocation2 + $0xf0] sm:$0xff] }
  0x8c   : > { %3635 = vst [vmem:[#allocation62_spill] sm:$0xff] %v2499_v43  ;;  %3636 = vst [vmem:[#allocation63_spill] sm:$0xff] %v2503_v32  ;;  %v2523_v32 = vadd.f32 %v2174_v8, %v375_v16  ;;  %v2526_v43 = vadd.f32 %v2174_v8, %v376_v61  ;;  %v379_v16 = vmul.f32 %v2177_v12, %v2511_v45 }
  0x8d   : > { %3637 = vst [vmem:[#allocation64_spill] sm:$0xff] %v2505_v50  ;;  %3638 = vst [vmem:[#allocation65_spill] sm:$0xff] %v2511_v45  ;;  %v380_v61 = vmul.f32 %v2177_v12, %v2513_v54  ;;  %v2572_v45 = vld [vmem:[#allocation2 + $0xdc] sm:$0xff] }
  0x8e   : > { %3639 = vst [vmem:[#allocation66_spill] sm:$0xff] %v2513_v54  ;;  %3640 = vst [vmem:[#allocation67_spill] sm:$0xff] %v2516_v35  ;;  %v2538_v35 = vadd.f32 %v2174_v8, %v378_v27  ;;  %v381_v27 = vmul.f32 %v2177_v12, %v2530_v62  ;;  %v2560_v54 = vmul.f32 %v2184_v17, %v2505_v50 }
  0x8f   : > { %3641 = vst [vmem:[#allocation68_spill] sm:$0xff] %v2520_v52  ;;  %3642 = vst [vmem:[#allocation69_spill] sm:$0xff] %v2523_v32  ;;  %v2545_v32 = vadd.f32 %v2174_v8, %v372_v53  ;;  %v2549_v52 = vmul.f32 %v2184_v17, %v2490_v44  ;;  %v2564_v53 = vmul.f32 %v2184_v17, %v2528_v6  ;;  %v2574_v44 = vld [vmem:[#allocation2 + $0xe4] sm:$0xff] }
  0x90   : > { %3643 = vst [vmem:[#allocation70_spill] sm:$0xff] %v2526_v43  ;;  %3644 = vst [vmem:[#allocation71_spill] sm:$0xff] %v2528_v6  ;;  %v347_v43 = vld [vmem:[#allocation2 + $0x108] sm:$0xff]  ;;  %v2577_v50 = vadd.f32 %v2174_v8, %v381_v27  ;;  %v2587_v6 = vmul.f32 %v2184_v17, %v2532_v49  ;;  %v2591_v27 = vmul.f32 %v2184_v17, %v2551_v28 }
  0x91   : > { %3645 = vst [vmem:[#allocation72_spill] sm:$0xff] %v2530_v62  ;;  %3646 = vst [vmem:[#allocation73_spill] sm:$0xff] %v2532_v49  ;;  %v349_v62 = vld [vmem:[#allocation2 + $0x120] sm:$0xff] }
  0x92   : > { %3647 = vst [vmem:[#allocation74_spill] sm:$0xff] %v2535_v24  ;;  %3648 = vst [vmem:[#allocation75_spill] sm:$0xff] %v2538_v35  ;;  %v382_v35 = vmul.f32 %v2177_v12, %v346_v11  ;;  %v348_v24 = vld [vmem:[#allocation2 + $0x110] sm:$0xff]  ;;  %v350_v11 = vld [vmem:[#allocation2 + $0x128] sm:$0xff] }
  0x93   : > { %3649 = vst [vmem:[#allocation76_spill] sm:$0xff] %v2545_v32  ;;  %3650 = vst [vmem:[#allocation77_spill] sm:$0xff] %v2549_v52  ;;  %v2567_v52 = vadd.f32 %v2174_v8, %v379_v16  ;;  %v2570_v32 = vadd.f32 %v2174_v8, %v380_v61  ;;  %v552_v16 = vld [vmem:[#allocation2 + $0xf4] sm:$0xff]  ;;  %v384_v61 = vmul.f32 %v2177_v12, %v348_v24  ;;  %v285_v49 = vld [vmem:[%s2152_s29 + $0xe0] sm:$0xff] }
  0x94   : > { %3651 = vst [vmem:[#allocation78_spill] sm:$0xff] %v2551_v28  ;;  %3652 = vst [vmem:[#allocation79_spill] sm:$0xff] %v2553_v60  ;;  %v386_v24 = vmul.f32 %v2177_v12, %v350_v11  ;;  %v284_v11 = vld [vmem:[%s2152_s29 + $0xd8] sm:$0xff] }
  0x95   : > { %3653 = vst [vmem:[#allocation80_spill] sm:$0xff] %v2560_v54  ;;  %3654 = vst [vmem:[#allocation81_spill] sm:$0xff] %v2564_v53  ;;  %v2580_v54 = vadd.f32 %v2174_v8, %v382_v35  ;;  %v280_v53 = vld [vmem:[%s2152_s29 + $0xb8] sm:$0xff]  ;;  %v554_v35 = vld [vmem:[#allocation2 + $0x10c] sm:$0xff] }
  0x96   : > { %3655 = vst [vmem:[#allocation82_spill] sm:$0xff] %v2567_v52  ;;  %3656 = vst [vmem:[#allocation83_spill] sm:$0xff] %v2570_v32  ;;  %v383_v52 = vmul.f32 %v2177_v12, %v347_v43  ;;  %v351_v32 = vld [vmem:[#allocation2 + $0x138] sm:$0xff]  ;;  %v385_v43 = vmul.f32 %v2177_v12, %v349_v62  ;;  %v2610_v62 = vadd.f32 %v2174_v8, %v384_v61  ;;  %v287_v61 = vld [vmem:[%s2152_s29 + $0xf0] sm:$0xff] }
  0x97   : > { %3657 = vst [vmem:[#allocation84_spill] sm:$0xff] %v2572_v45  ;;  %3658 = vst [vmem:[#allocation85_spill] sm:$0xff] %v2577_v50  ;;  %v553_v50 = vld [vmem:[#allocation2 + $0xfc] sm:$0xff] }
  0x98   : > { %3659 = vst [vmem:[#allocation86_spill] sm:$0xff] %v2580_v54  ;;  %3660 = vst [vmem:[#allocation87_spill] sm:$0xff] %v2587_v6  ;;  %v555_v54 = vld [vmem:[#allocation2 + $0x114] sm:$0xff]  ;;  %v2600_v6 = vmul.f32 %v2184_v17, %v2553_v60  ;;  %v2607_v28 = vadd.f32 %v2174_v8, %v383_v52  ;;  %v2623_v52 = vmul.f32 %v2180_v13, %v280_v53 }
  0x99   : > { %3661 = vst [vmem:[#allocation88_spill] sm:$0xff] %v2591_v27  ;;  %313 = vst [vmem:[#allocation2 + $0x142] sm:$0xff] %v280_v53  ;;  %v2604_v27 = vmul.f32 %v2184_v17, %v2572_v45  ;;  %v2619_v45 = vadd.f32 %v2174_v8, %v386_v24  ;;  %v2628_v60 = vmul.f32 %v2180_v13, %v281_v58  ;;  %v557_v53 = vld [vmem:[#allocation2 + $0x12c] sm:$0xff] }
  0x9a   : > { %3662 = vst [vmem:[#allocation89_spill] sm:$0xff] %v2600_v6  ;;  %3664 = vst [vmem:[#allocation91_spill] sm:$0xff] %v2607_v28  ;;  %v2616_v6 = vadd.f32 %v2174_v8, %v385_v43  ;;  %v323_v28 = vld [vmem:[#allocation6 + $0x4] sm:$0x7]  ;;  %v2631_v43 = vmul.f32 %v2180_v13, %v282_v38  ;;  %v2634_v24 = vmul.f32 %v2180_v13, %v283_v51 }
  0x9b   : > { %3663 = vst [vmem:[#allocation90_spill] sm:$0xff] %v2604_v27  ;;  %3665 = vst [vmem:[#allocation92_spill] sm:$0xff] %v2610_v62  ;;  %v387_v27 = vmul.f32 %v2177_v12, %v351_v32  ;;  %v288_v62 = vld [vmem:[%s2152_s29 + $0xf8] sm:$0xff]  ;;  %v2637_v32 = vmul.f32 %v2180_v13, %v284_v11  ;;  %v2653_v13 = vmul.f32 %v2184_v17, %v553_v50 }
  0x9c   : > { %314 = vst [vmem:[#allocation2 + $0x152] sm:$0xff] %v281_v58  ;;  %315 = vst [vmem:[#allocation2 + $0x15a] sm:$0xff] %v282_v38  ;;  %v556_v58 = vld [vmem:[#allocation2 + $0x124] sm:$0xff] }
  0x9d   : > { %316 = vst [vmem:[#allocation2 + $0x16a] sm:$0xff] %v283_v51  ;;  %3666 = vst [vmem:[#allocation93_spill] sm:$0xff] %v2616_v6  ;;  %v2647_v38 = vadd.f32 %v2174_v8, %v387_v27  ;;  %v2650_v51 = vrot.slane %v323_v28, %v2162_v3 }
  0x9e   : > { %3667 = vst [vmem:[#allocation94_spill] sm:$0xff] %v2619_v45  ;;  %3668 = vst [vmem:[#allocation95_spill] sm:$0xff] %v2623_v52 }
  0x9f   : > { %317 = vst [vmem:[#allocation2 + $0x172] sm:$0xff] %v284_v11  ;;  %318 = vst [vmem:[#allocation2 + $0x182] sm:$0xff] %v285_v49  ;;  %v2644_v49 = vmul.f32 %v2184_v17, %v552_v16  ;;  %v2659_v11 = vmul.f32 %v2184_v17, %v555_v54  ;;  %v601_v16 = vadd.f32 %v2243_v41, %v2434_v55 }
  0xa0   : > { %319 = vst [vmem:[#allocation2 + $0x18a] sm:$0xff] %v286_v37  ;;  %3669 = vst [vmem:[#allocation96_spill] sm:$0xff] %v2628_v60  ;;  %v2641_v37 = vmul.f32 %v2184_v17, %v2574_v44  ;;  %v668_v27 = vmul.f32 %v2650_v51, %v2263_v47  ;;  %v669_v50 = vmul.f32 %v2650_v51, %v2345_v18 }
  0xa1   : > { %3670 = vst [vmem:[#allocation97_spill] sm:$0xff] %v2631_v43  ;;  %3671 = vst [vmem:[#allocation98_spill] sm:$0xff] %v2634_v24  ;;  %v324_v43 = vld [vmem:[#allocation6 + $0x8] sm:$0x7]  ;;  %v2677_v54 = vmul.f32 %v2184_v17, %v557_v53  ;;  %v352_v24 = vld [vmem:[#allocation2 + $0x140] sm:$0xff] }
  0xa2   : > { %3672 = vst [vmem:[#allocation99_spill] sm:$0xff] %v2637_v32  ;;  %320 = vst [vmem:[#allocation2 + $0x19a] sm:$0xff] %v287_v61  ;;  %v2666_v61 = vrot.slane %v323_v28, %v2164_v4  ;;  %v2669_v32 = vrot.slane %v323_v28, %v2166_v5  ;;  %v2680_v41 = vrot.slane %v324_v43, %v2162_v3 }
  0xa3   : > { %321 = vst [vmem:[#allocation2 + $0x1a2] sm:$0xff] %v288_v62  ;;  %3673 = vst [vmem:[#allocation100_spill] sm:$0xff] %v2647_v38  ;;  %v2656_v62 = vmul.f32 %v2184_v17, %v554_v35  ;;  %v2674_v35 = vmul.f32 %v2184_v17, %v556_v58  ;;  %v2683_v47 = vrot.slane %v324_v43, %v2164_v4  ;;  %v353_v28 = vld [vmem:[#allocation2 + $0x150] sm:$0xff]  ;;  %v354_v60 = vld [vmem:[#allocation2 + $0x158] sm:$0xff] }
  0xa4   : > { %3674 = vst [vmem:[#allocation101_spill] sm:$0xff] %v2659_v11  ;;  %3676 = vst [vmem:[#allocation103_spill] sm:$0xff] %v2677_v54  ;;  %v388_v55 = vmul.f32 %v2177_v12, %v352_v24  ;;  %v700_v52 = vadd.f32 %v668_v27, %v2430_v57  ;;  %v768_v18 = vmul.f32 %v2666_v61, %v2169_v7  ;;  %v355_v38 = vld [vmem:[#allocation2 + $0x168] sm:$0xff]  ;;  %v558_v57 = vld [vmem:[#allocation2 + $0x13c] sm:$0xff] }
  0xa5   : > { %3675 = vst [vmem:[#allocation102_spill] sm:$0xff] %v2674_v35  ;;  %v769_v58 = vmul.f32 %v2666_v61, %v2190_v25  ;;  %v389_v53 = vmul.f32 %v2177_v12, %v353_v28  ;;  %v390_v3 = vmul.f32 %v2177_v12, %v354_v60  ;;  %v2694_v4 = vrot.slane %v324_v43, %v2166_v5  ;;  %v559_v27 = vld [vmem:[#allocation2 + $0x144] sm:$0xff]  ;;  %v560_v5 = vld [vmem:[#allocation2 + $0x154] sm:$0xff] }
  0xa6   : > { %v356_v54 = vld [vmem:[#allocation2 + $0x170] sm:$0xff]  ;;  %v701_v24 = vadd.f32 %v669_v50, %v601_v16  ;;  %v2697_v45 = vadd.f32 %v2174_v8, %v388_v55  ;;  %v391_v35 = vmul.f32 %v2177_v12, %v355_v38  ;;  %v868_v28 = vmul.f32 %v2669_v32, %v2347_v19 }
  0xa7   : > { %v392_v6 = vmul.f32 %v2177_v12, %v356_v54  ;;  %v2704_v60 = vadd.f32 %v2174_v8, %v389_v53  ;;  %v2707_v11 = vadd.f32 %v2174_v8, %v390_v3  ;;  %v969_v43 = vmul.f32 %v2680_v41, %v2388_v22 }
  0xa8   : > { %v1069_v16 = vmul.f32 %v2683_v47, %v2207_v30  ;;  %v2714_v38 = vadd.f32 %v2174_v8, %v391_v35  ;;  %v800_v19 = vadd.f32 %v768_v18, %v700_v52  ;;  %v801_v50 = vadd.f32 %v769_v58, %v701_v24 }
  0xa9   : > { %v2717_v12 = vadd.f32 %v2174_v8, %v392_v6  ;;  %v2720_v54 = vmul.f32 %v2184_v17, %v558_v57  ;;  %v2723_v55 = vmul.f32 %v2184_v17, %v559_v27  ;;  %v1169_v53 = vmul.f32 %v2694_v4, %v2423_v10 }
  0xaa   : > { %3677 = vst [vmem:[#allocation104_spill] sm:$0xff] %v2714_v38  ;;  %v869_v3 = vmul.f32 %v2669_v32, %v2349_v20  ;;  %v2730_v35 = vmul.f32 %v2184_v17, %v560_v5  ;;  %v900_v38 = vadd.f32 %v868_v28, %v800_v19  ;;  %v502_v8 = vadd.f32 %v2216_v33, %v2240_v40 }
  0xab   : > { %3678 = vst [vmem:[#allocation105_spill] sm:$0xff] %v2717_v12  ;;  %v670_v6 = vmul.f32 %v2650_v51, %v2364_v0  ;;  %v970_v18 = vmul.f32 %v2680_v41, %v2390_v21  ;;  %v1070_v58 = vmul.f32 %v2683_v47, %v2210_v31  ;;  %v1170_v20 = vmul.f32 %v2694_v4, %v2425_v15 }
  0xac   : > { %v901_v52 = vadd.f32 %v869_v3, %v801_v50  ;;  %v1001_v24 = vadd.f32 %v969_v43, %v900_v38  ;;  %v602_v57 = vadd.f32 %v2246_v42, %v502_v8  ;;  %v770_v27 = vmul.f32 %v2666_v61, %v2193_v26 }
  0xad   : > { %v503_v33 = vadd.f32 %v2219_v34, %v2237_v39  ;;  %v870_v0 = vmul.f32 %v2669_v32, %v2368_v2  ;;  %v971_v28 = vmul.f32 %v2680_v41, %v2409_v56  ;;  %v671_v5 = vmul.f32 %v2650_v51, %v2366_v1 }
  0xae   : > { %v1002_v40 = vadd.f32 %v970_v18, %v901_v52  ;;  %v1101_v19 = vadd.f32 %v1069_v16, %v1001_v24  ;;  %v702_v43 = vadd.f32 %v670_v6, %v602_v57  ;;  %v771_v38 = vmul.f32 %v2666_v61, %v2204_v29 }
  0xaf   : > { %v603_v42 = vadd.f32 %v2261_v46, %v503_v33  ;;  %v1071_v34 = vmul.f32 %v2683_v47, %v2228_v36  ;;  %v1171_v39 = vmul.f32 %v2694_v4, %v2457_v59  ;;  %v504_v2 = vadd.f32 %v2267_v48, %v2401_v9 }
  0xb0   : > { %v1102_v50 = vadd.f32 %v1070_v58, %v1002_v40  ;;  %v1201_v3 = vadd.f32 %v1169_v53, %v1101_v19  ;;  %v802_v8 = vadd.f32 %v770_v27, %v702_v43  ;;  %v871_v16 = vmul.f32 %v2669_v32, %v2386_v23  ;;  %v3679_v53 = vld [vmem:[#allocation12_spill] sm:$0xff]  ;;  %v3681_v43 = vld [vmem:[#allocation13_spill] sm:$0xff] }
  0xb1   : > { %v703_v1 = vadd.f32 %v671_v5, %v603_v42  ;;  %v604_v6 = vadd.f32 %v2405_v63, %v504_v2  ;;  %v672_v52 = vmul.f32 %v2650_v51, %v2388_v22  ;;  %v772_v18 = vmul.f32 %v2666_v61, %v2207_v30  ;;  %v3680_v40 = vld [vmem:[#allocation48_spill] sm:$0xff] }
  0xb2   : > { %v1202_v46 = vadd.f32 %v1170_v20, %v1102_v50  ;;  %v1265_v58 = vmul.f32 0.044715, %v1201_v3  ;;  %v902_v24 = vadd.f32 %v870_v0, %v802_v8  ;;  %v972_v48 = vmul.f32 %v2680_v41, %v2427_v14  ;;  %v3683_v50 = vld [vmem:[#allocation17_spill] sm:$0xff] }
  0xb3   : > { %v803_v57 = vadd.f32 %v771_v38, %v703_v1  ;;  %v1072_v27 = vmul.f32 %v2683_v47, %v3679_v53  ;;  %v704_v23 = vadd.f32 %v672_v52, %v604_v6  ;;  %v872_v63 = vmul.f32 %v2669_v32, %v2423_v10  ;;  %v3682_v38 = vld [vmem:[#allocation45_spill] sm:$0xff] }
  0xb4   : > { %v1266_v9 = vmul.f32 0.044715, %v1202_v46  ;;  %v1297_v20 = vmul.f32 %v1265_v58, %v1201_v3  ;;  %v1003_v33 = vadd.f32 %v971_v28, %v902_v24  ;;  %v973_v5 = vmul.f32 %v2680_v41, %v3680_v40 }
  0xb5   : > { %v903_v22 = vadd.f32 %v871_v16, %v803_v57  ;;  %v804_v0 = vadd.f32 %v772_v18, %v704_v23  ;;  %v1073_v42 = vmul.f32 %v2683_v47, %v3681_v43  ;;  %v505_v2 = vadd.f32 %v3683_v50, %v3682_v38  ;;  %v3684_v16 = vld [vmem:[#allocation43_spill] sm:$0xff]  ;;  %v3685_v23 = vld [vmem:[#allocation56_spill] sm:$0xff] }
  0xb6   : > { %v1298_v19 = vmul.f32 %v1266_v9, %v1202_v46  ;;  %v1329_v8 = vmul.f32 %v1297_v20, %v1201_v3  ;;  %v1103_v1 = vadd.f32 %v1071_v34, %v1003_v33  ;;  %v673_v10 = vmul.f32 %v2650_v51, %v2390_v21 }
  0xb7   : > { %v1004_v6 = vadd.f32 %v972_v48, %v903_v22  ;;  %v904_v28 = vadd.f32 %v872_v63, %v804_v0  ;;  %v605_v58 = vadd.f32 %v3684_v16, %v505_v2  ;;  %v773_v24 = vmul.f32 %v2666_v61, %v2210_v31  ;;  %v3686_v63 = vld [vmem:[#allocation60_spill] sm:$0xff] }
  0xb8   : > { %v1330_v52 = vmul.f32 %v1298_v19, %v1202_v46  ;;  %v1361_v18 = vadd.f32 %v1329_v8, %v1201_v3  ;;  %v1203_v57 = vadd.f32 %v1171_v39, %v1103_v1  ;;  %v1172_v12 = vmul.f32 %v2694_v4, %v3685_v23 }
  0xb9   : > { %v1104_v9 = vadd.f32 %v1072_v27, %v1004_v6  ;;  %v2788_v38 = vmul.f32 0.5, %v1201_v3  ;;  %v1005_v48 = vadd.f32 %v973_v5, %v904_v28  ;;  %v705_v20 = vadd.f32 %v673_v10, %v605_v58  ;;  %v3687_v3 = vld [vmem:[#allocation49_spill] sm:$0xff]  ;;  %v3688_v10 = vld [vmem:[#allocation14_spill] sm:$0xff] }
  0xba   : > { %v1362_v34 = vadd.f32 %v1330_v52, %v1202_v46  ;;  %v1393_v33 = vmul.f32 0.7978846, %v1361_v18  ;;  %v1267_v21 = vmul.f32 0.044715, %v1203_v57  ;;  %v1173_v19 = vmul.f32 %v2694_v4, %v3686_v63  ;;  %v3690_v58 = vld [vmem:[#allocation18_spill] sm:$0xff] }
  0xbb   : > { %v1204_v22 = vadd.f32 %v1172_v12, %v1104_v9  ;;  %v1105_v50 = vadd.f32 %v1073_v42, %v1005_v48  ;;  %v805_v2 = vadd.f32 %v773_v24, %v705_v20  ;;  %v873_v39 = vmul.f32 %v2669_v32, %v2425_v15  ;;  %v3689_v42 = vld [vmem:[#allocation46_spill] sm:$0xff] }
  0xbc   : > { %v1394_v0 = vmul.f32 0.7978846, %v1362_v34  ;;  %1797 = vtanh.f32 %v1393_v33  ;;  %v1299_v27 = vmul.f32 %v1267_v21, %v1203_v57  ;;  %v974_v1 = vmul.f32 %v2680_v41, %v3687_v3  ;;  %v3691_v33 = vld [vmem:[#allocation44_spill] sm:$0xff] }
  0xbd   : > { %v1268_v8 = vmul.f32 0.044715, %v1204_v22  ;;  %v1205_v5 = vadd.f32 %v1173_v19, %v1105_v50  ;;  %v905_v6 = vadd.f32 %v873_v39, %v805_v2  ;;  %v1074_v12 = vmul.f32 %v2683_v47, %v3688_v10  ;;  %v3692_v2 = vld [vmem:[#allocation64_spill] sm:$0xff] }
  0xbe   : > { %1799 = vtanh.f32 %v1394_v0  ;;  %v1234_v52 = vmul.f32 0.5, %v1202_v46  ;;  %v1331_v28 = vmul.f32 %v1299_v27, %v1203_v57  ;;  %v506_v24 = vadd.f32 %v3690_v58, %v3689_v42 }
  0xbf   : > { %v1300_v16 = vmul.f32 %v1268_v8, %v1204_v22  ;;  %v2800_v18 = vmul.f32 0.5, %v1203_v57  ;;  %v1269_v15 = vmul.f32 0.044715, %v1205_v5  ;;  %v1006_v9 = vadd.f32 %v974_v1, %v905_v6 }
  0xc0   : > { %v674_v34 = vmul.f32 %v2650_v51, %v2409_v56  ;;  %v1363_v48 = vadd.f32 %v1331_v28, %v1203_v57  ;;  %v606_v21 = vadd.f32 %v3691_v33, %v506_v24  ;;  %v774_v19 = vmul.f32 %v2666_v61, %v2228_v36  ;;  %v3694_v36 = vld [vmem:[#allocation21_spill] sm:$0xff] }
  0xc1   : > { %v1332_v20 = vmul.f32 %v1300_v16, %v1204_v22  ;;  %v2807_v46 = vmul.f32 0.5, %v1204_v22  ;;  %v1301_v0 = vmul.f32 %v1269_v15, %v1205_v5  ;;  %v1106_v50 = vadd.f32 %v1074_v12, %v1006_v9  ;;  %v3693_v16 = vld [vmem:[#allocation50_spill] sm:$0xff]  ;;  %v3695_v9 = vld [vmem:[#allocation47_spill] sm:$0xff] }
  0xc2   : > { %v1174_v39 = vmul.f32 %v2694_v4, %v3692_v2  ;;  %v1395_v27 = vmul.f32 0.7978846, %v1363_v48  ;;  %v2811_v1 = vmul.f32 0.5, %v1205_v5  ;;  %v706_v6 = vadd.f32 %v674_v34, %v606_v21  ;;  %v3697_v21 = vld [vmem:[#allocation15_spill] sm:$0xff] }
  0xc3   : > { %v1364_v8 = vadd.f32 %v1332_v20, %v1204_v22  ;;  %v1333_v56 = vmul.f32 %v1301_v0, %v1205_v5  ;;  %v874_v28 = vmul.f32 %v2669_v32, %v2457_v59  ;;  %v507_v42 = vadd.f32 %v3694_v36, %v3693_v16  ;;  %v3696_v59 = vld [vmem:[#allocation51_spill] sm:$0xff] }
  0xc4   : > { %v2813_v57 = vadd.f32 %v1174_v39, %v1106_v50  ;;  %1801 = vtanh.f32 %v1395_v27  ;;  %v806_v12 = vadd.f32 %v774_v19, %v706_v6  ;;  %v675_v24 = vmul.f32 %v2650_v51, %v2427_v14  ;;  %v3698_v14 = vld [vmem:[#allocation71_spill] sm:$0xff] }
  0xc5   : > { %v1396_v58 = vmul.f32 0.7978846, %v1364_v8  ;;  %v1365_v15 = vadd.f32 %v1333_v56, %v1205_v5  ;;  %v607_v34 = vadd.f32 %v3695_v9, %v507_v42  ;;  %v775_v48 = vmul.f32 %v2666_v61, %v3679_v53  ;;  %v3699_v53 = vld [vmem:[#allocation52_spill] sm:$0xff]  ;;  %v3700_v56 = vld [vmem:[#allocation53_spill] sm:$0xff]  ;;  %v3702_v9 = vld [vmem:[#allocation54_spill] sm:$0xff] }
  0xc6   : > { %v1270_v22 = vmul.f32 0.044715, %v2813_v57  ;;  %v906_v20 = vadd.f32 %v874_v28, %v806_v12  ;;  %v975_v33 = vmul.f32 %v2680_v41, %v3696_v59  ;;  %v1075_v0 = vmul.f32 %v2683_v47, %v3697_v21  ;;  %v3701_v28 = vld [vmem:[#allocation22_spill] sm:$0xff] }
  0xc7   : > { %1803 = vtanh.f32 %v1396_v58  ;;  %v1397_v19 = vmul.f32 0.7978846, %v1365_v15  ;;  %v1175_v5 = vmul.f32 %v2694_v4, %v3698_v14  ;;  %v707_v39 = vadd.f32 %v675_v24, %v607_v34 }
  0xc8   : > { %v1302_v50 = vmul.f32 %v1270_v22, %v2813_v57  ;;  %v1007_v27 = vadd.f32 %v975_v33, %v906_v20  ;;  %v875_v8 = vmul.f32 %v2669_v32, %v3685_v23  ;;  %v976_v6 = vmul.f32 %v2680_v41, %v3699_v53 }
  0xc9   : > { %v508_v16 = vadd.f32 %v3701_v28, %v3700_v56  ;;  %v1798_v36 = vpop.eup %1797  ;;  %1805 = vtanh.f32 %v1397_v19  ;;  %v807_v58 = vadd.f32 %v775_v48, %v707_v39  ;;  %v676_v12 = vmul.f32 %v2650_v51, %v3680_v40  ;;  %v3703_v56 = vld [vmem:[#allocation16_spill] sm:$0xff]  ;;  %v3704_v40 = vld [vmem:[#allocation73_spill] sm:$0xff] }
  0xca   : > { %v1334_v42 = vmul.f32 %v1302_v50, %v2813_v57  ;;  %v1457_v24 = vadd.f32 1.0, %v1798_v36  ;;  %v1107_v22 = vadd.f32 %v1075_v0, %v1007_v27  ;;  %v776_v23 = vmul.f32 %v2666_v61, %v3681_v43 }
  0xcb   : > { %v1800_v15 = vpop.eup %1799  ;;  %v608_v34 = vadd.f32 %v3702_v9, %v508_v16  ;;  %v907_v21 = vadd.f32 %v875_v8, %v807_v58  ;;  %v1076_v19 = vmul.f32 %v2683_v47, %v3703_v56  ;;  %v1176_v0 = vmul.f32 %v2694_v4, %v3704_v40  ;;  %v3705_v58 = vld [vmem:[#allocation57_spill] sm:$0xff]  ;;  %v3709_v9 = vld [vmem:[#allocation78_spill] sm:$0xff] }
  0xcc   : > { %v1458_v20 = vadd.f32 1.0, %v1800_v15  ;;  %v1366_v33 = vadd.f32 %v1334_v42, %v2813_v57  ;;  %v1489_v48 = vmul.f32 %v1457_v24, %v2788_v38  ;;  %v2848_v50 = vadd.f32 %v1175_v5, %v1107_v22  ;;  %v3706_v24 = vld [vmem:[#allocation62_spill] sm:$0xff] }
  0xcd   : > { %v708_v39 = vadd.f32 %v676_v12, %v608_v34  ;;  %v1008_v16 = vadd.f32 %v976_v6, %v907_v21  ;;  %v876_v43 = vmul.f32 %v2669_v32, %v3686_v63  ;;  %v977_v38 = vmul.f32 %v2680_v41, %v3705_v58  ;;  %v3707_v12 = vld [vmem:[#allocation27_spill] sm:$0xff] }
  0xce   : > { %v1490_v27 = vmul.f32 %v1458_v20, %v1234_v52  ;;  %v1398_v28 = vmul.f32 0.7978846, %v1366_v33  ;;  %v1553_v8 = vadd.f32 %v1489_v48, %v2169_v7  ;;  %v1271_v36 = vmul.f32 0.044715, %v2848_v50  ;;  %v3708_v6 = vld [vmem:[#allocation19_spill] sm:$0xff] }
  0xcf   : > { %v808_v42 = vadd.f32 %v776_v23, %v708_v39  ;;  %v1108_v15 = vadd.f32 %v1076_v19, %v1008_v16  ;;  %v509_v52 = vadd.f32 %v3707_v12, %v3706_v24  ;;  %v1077_v22 = vmul.f32 %v2683_v47, %v3708_v6  ;;  %v3710_v20 = vld [vmem:[#allocation55_spill] sm:$0xff]  ;;  %v3711_v16 = vld [vmem:[#allocation61_spill] sm:$0xff]  ;;  %v3714_v12 = vld [vmem:[#allocation28_spill] sm:$0xff] }
  0xd0   : > { %v1554_v5 = vadd.f32 %v1490_v27, %v2190_v25  ;;  %1807 = vtanh.f32 %v1398_v28  ;;  %1585 = vst [vmem:[%s2863_s17] sm:$0xff] %v1553_v8  ;;  %v1303_v7 = vmul.f32 %v1271_v36, %v2848_v50  ;;  %v1177_v25 = vmul.f32 %v2694_v4, %v3709_v9  ;;  %v3712_v8 = vld [vmem:[#allocation20_spill] sm:$0xff]  ;;  %v3713_v24 = vld [vmem:[#allocation67_spill] sm:$0xff] }
  0xd1   : > { %v908_v63 = vadd.f32 %v876_v43, %v808_v42  ;;  %v1802_v34 = vpop.eup %1801  ;;  %v2872_v23 = vadd.f32 %v1176_v0, %v1108_v15  ;;  %v609_v33 = vadd.f32 %v3710_v20, %v509_v52  ;;  %v677_v21 = vmul.f32 %v2650_v51, %v3687_v3 }
  0xd2   : > { %1586 = vst [vmem:[%s2863_s17 + $0x8] sm:$0xff] %v1554_v5  ;;  %v777_v56 = vmul.f32 %v2666_v61, %v3688_v10  ;;  %v1459_v19 = vadd.f32 1.0, %v1802_v34  ;;  %v1335_v48 = vmul.f32 %v1303_v7, %v2848_v50  ;;  %v877_v39 = vmul.f32 %v2669_v32, %v3692_v2 }
  0xd3   : > { %v1009_v40 = vadd.f32 %v977_v38, %v908_v63  ;;  %v1272_v28 = vmul.f32 0.044715, %v2872_v23  ;;  %v709_v0 = vadd.f32 %v677_v21, %v609_v33  ;;  %v978_v43 = vmul.f32 %v2680_v41, %v3711_v16  ;;  %v561_v38 = vld [vmem:[#allocation2 + $0x15c] sm:$0xff]  ;;  %v3715_v21 = vld [vmem:[#allocation63_spill] sm:$0xff] }
  0xd4   : > { %v1804_v27 = vpop.eup %1803  ;;  %v1078_v3 = vmul.f32 %v2683_v47, %v3712_v8  ;;  %v1491_v36 = vmul.f32 %v1459_v19, %v2800_v18  ;;  %v1367_v42 = vadd.f32 %v1335_v48, %v2848_v50  ;;  %v510_v52 = vadd.f32 %v3714_v12, %v3713_v24  ;;  %v742_v19 = vld [vmem:[#allocation2 + $0xaa] sm:$0xff]  ;;  %v3719_v24 = vld [vmem:[#allocation29_spill] sm:$0xff] }
  0xd5   : > { %v1460_v10 = vadd.f32 1.0, %v1804_v27  ;;  %v1109_v5 = vadd.f32 %v1077_v22, %v1009_v40  ;;  %v1304_v2 = vmul.f32 %v1272_v28, %v2872_v23  ;;  %v809_v15 = vadd.f32 %v777_v56, %v709_v0  ;;  %v3716_v0 = vld [vmem:[#allocation79_spill] sm:$0xff] }
  0xd6   : > { %v678_v7 = vmul.f32 %v2650_v51, %v3696_v59  ;;  %v1806_v63 = vpop.eup %1805  ;;  %v1555_v6 = vadd.f32 %v1491_v36, %v2193_v26  ;;  %v1399_v9 = vmul.f32 0.7978846, %v1367_v42  ;;  %v610_v56 = vadd.f32 %v3715_v21, %v510_v52 }
  0xd7   : > { %v1492_v18 = vmul.f32 %v1460_v10, %v2807_v46  ;;  %v1209_v34 = vadd.f32 %v1177_v25, %v1109_v5  ;;  %v1461_v22 = vadd.f32 1.0, %v1806_v63  ;;  %v1336_v20 = vmul.f32 %v1304_v2, %v2872_v23  ;;  %v3717_v2 = vld [vmem:[#allocation65_spill] sm:$0xff] }
  0xd8   : > { %v909_v33 = vadd.f32 %v877_v39, %v809_v15  ;;  %v2899_v48 = vmul.f32 %v2184_v17, %v561_v38  ;;  %1587 = vst [vmem:[%s2863_s17 + $0x10] sm:$0xff] %v1555_v6  ;;  %1809 = vtanh.f32 %v1399_v9  ;;  %v710_v27 = vadd.f32 %v678_v7, %v610_v56  ;;  %v743_v63 = vld [vmem:[#allocation2 + $0xb2] sm:$0xff] }
  0xd9   : > { %v1556_v59 = vadd.f32 %v1492_v18, %v2204_v29  ;;  %v1273_v26 = vmul.f32 0.044715, %v1209_v34  ;;  %v1493_v46 = vmul.f32 %v1461_v22, %v2811_v1  ;;  %v1368_v40 = vadd.f32 %v1336_v20, %v2872_v23  ;;  %v3721_v18 = vld [vmem:[#allocation68_spill] sm:$0xff]  ;;  %v843_v20 = vld [vmem:[#allocation2 + $0xb4] sm:$0xff] }
  0xda   : > { %v1010_v25 = vadd.f32 %v978_v43, %v909_v33  ;;  %v1238_v39 = vmul.f32 0.5, %v2813_v57  ;;  %v1178_v8 = vmul.f32 %v2694_v4, %v3716_v0  ;;  %v778_v36 = vmul.f32 %v2666_v61, %v742_v19  ;;  %v3718_v57 = vld [vmem:[#allocation76_spill] sm:$0xff]  ;;  %v3723_v0 = vld [vmem:[#allocation58_spill] sm:$0xff] }
  0xdb   : > { %1588 = vst [vmem:[%s2863_s17 + $0x18] sm:$0xff] %v1556_v59  ;;  %v1305_v28 = vmul.f32 %v1273_v26, %v1209_v34  ;;  %v1557_v29 = vadd.f32 %v1493_v46, %v2207_v30  ;;  %v1400_v10 = vmul.f32 0.7978846, %v1368_v40  ;;  %v878_v1 = vmul.f32 %v2669_v32, %v3698_v14  ;;  %v3720_v30 = vld [vmem:[#allocation25_spill] sm:$0xff] }
  0xdc   : > { %v1110_v42 = vadd.f32 %v1078_v3, %v1010_v25  ;;  %v810_v38 = vadd.f32 %v778_v36, %v710_v27  ;;  %v979_v15 = vmul.f32 %v2680_v41, %v3717_v2  ;;  %v511_v12 = vadd.f32 %v3719_v24, %v3718_v57 }
  0xdd   : > { %v1808_v5 = vpop.eup %1807  ;;  %v1337_v43 = vmul.f32 %v1305_v28, %v1209_v34  ;;  %1589 = vst [vmem:[%s2863_s17 + $0x20] sm:$0xff] %v1557_v29  ;;  %1811 = vtanh.f32 %v1400_v10  ;;  %v1079_v3 = vmul.f32 %v2683_v47, %v3720_v30  ;;  %v679_v22 = vmul.f32 %v2650_v51, %v3699_v53  ;;  %v3722_v53 = vld [vmem:[#allocation84_spill] sm:$0xff]  ;;  %v744_v29 = vld [vmem:[#allocation2 + $0xc2] sm:$0xff] }
  0xde   : > { %v1462_v52 = vadd.f32 1.0, %v1808_v5  ;;  %v2918_v7 = vadd.f32 %v1178_v8, %v1110_v42  ;;  %v910_v14 = vadd.f32 %v878_v1, %v810_v38  ;;  %v611_v9 = vadd.f32 %v3721_v18, %v511_v12  ;;  %v3724_v8 = vld [vmem:[#allocation37_spill] sm:$0xff]  ;;  %v3726_v5 = vld [vmem:[#allocation26_spill] sm:$0xff]  ;;  %v844_v38 = vld [vmem:[#allocation2 + $0xc4] sm:$0xff] }
  0xdf   : > { %v1369_v6 = vadd.f32 %v1337_v43, %v1209_v34  ;;  %v1239_v21 = vmul.f32 0.5, %v2848_v50  ;;  %v2927_v56 = vmul.f32 0.5, %v2872_v23  ;;  %v779_v40 = vmul.f32 %v2666_v61, %v743_v63  ;;  %v3727_v12 = vld [vmem:[#allocation77_spill] sm:$0xff]  ;;  %v3729_v18 = vld [vmem:[#allocation38_spill] sm:$0xff] }
  0xe0   : > { %v1494_v33 = vmul.f32 %v1462_v52, %v1238_v39  ;;  %v1274_v19 = vmul.f32 0.044715, %v2918_v7  ;;  %v1011_v26 = vadd.f32 %v979_v15, %v910_v14  ;;  %v711_v46 = vadd.f32 %v679_v22, %v611_v9  ;;  %v3728_v14 = vld [vmem:[#allocation59_spill] sm:$0xff] }
  0xe1   : > { %v1401_v59 = vmul.f32 0.7978846, %v1369_v6  ;;  %v1179_v39 = vmul.f32 %v2694_v4, %v3722_v53  ;;  %v879_v50 = vmul.f32 %v2669_v32, %v843_v20  ;;  %v512_v36 = vadd.f32 %v3724_v8, %v3723_v0  ;;  %v945_v6 = vld [vmem:[#allocation2 + $0xf0] sm:$0xff] }
  0xe2   : > { %v1558_v25 = vadd.f32 %v1494_v33, %v2210_v31  ;;  %v1306_v27 = vmul.f32 %v1274_v19, %v2918_v7  ;;  %v1111_v28 = vadd.f32 %v1079_v3, %v1011_v26  ;;  %v811_v23 = vadd.f32 %v779_v40, %v711_v46  ;;  %v3725_v31 = vld [vmem:[#allocation66_spill] sm:$0xff]  ;;  %v745_v19 = vld [vmem:[#allocation2 + $0xca] sm:$0xff]  ;;  %v2959_v46 = vld [vmem:[#allocation2 + $0xf2] sm:$0xff] }
  0xe3   : > { %1813 = vtanh.f32 %v1401_v59  ;;  %v2939_v10 = vmul.f32 0.5, %v1209_v34  ;;  %v980_v1 = vmul.f32 %v2680_v41, %v3725_v31  ;;  %v1080_v43 = vmul.f32 %v2683_v47, %v3726_v5  ;;  %v3730_v40 = vld [vmem:[#allocation80_spill] sm:$0xff]  ;;  %v2966_v0 = vld [vmem:[#allocation2 + $0xf4] sm:$0xff] }
  0xe4   : > { %1590 = vst [vmem:[%s2863_s17 + $0x28] sm:$0xff] %v1558_v25  ;;  %v1338_v42 = vmul.f32 %v1306_v27, %v2918_v7  ;;  %v2946_v15 = vadd.f32 %v1179_v39, %v1111_v28  ;;  %v911_v57 = vadd.f32 %v879_v50, %v811_v23  ;;  %v1180_v24 = vmul.f32 %v2694_v4, %v2574_v44  ;;  %v845_v28 = vld [vmem:[#allocation2 + $0xcc] sm:$0xff] }
  0xe5   : > { %v612_v52 = vadd.f32 %v3727_v12, %v512_v36  ;;  %v1810_v30 = vpop.eup %1809  ;;  %v680_v3 = vmul.f32 %v2650_v51, %v3705_v58  ;;  %v780_v63 = vmul.f32 %v2666_v61, %v744_v29  ;;  %v513_v9 = vadd.f32 %v3729_v18, %v3728_v14  ;;  %v946_v29 = vld [vmem:[#allocation2 + $0xf8] sm:$0xff] }
  0xe6   : > { %v1370_v34 = vadd.f32 %v1338_v42, %v2918_v7  ;;  %v1463_v22 = vadd.f32 1.0, %v1810_v30  ;;  %v1275_v20 = vmul.f32 0.044715, %v2946_v15  ;;  %v1012_v33 = vadd.f32 %v980_v1, %v911_v57  ;;  %v1861_v1 = vld [vmem:[#allocation2 + $0x7a] sm:$0xff] }
  0xe7   : > { %v880_v44 = vmul.f32 %v2669_v32, %v844_v38  ;;  %v712_v26 = vadd.f32 %v680_v3, %v612_v52  ;;  %v613_v25 = vadd.f32 %v3730_v40, %v513_v9  ;;  %v681_v58 = vmul.f32 %v2650_v51, %v3711_v16  ;;  %v2975_v30 = vld [vmem:[#allocation2 + $0xfa] sm:$0xff] }
  0xe8   : > { %v1402_v59 = vmul.f32 0.7978846, %v1370_v34  ;;  %v1495_v27 = vmul.f32 %v1463_v22, %v1239_v21  ;;  %v1307_v53 = vmul.f32 %v1275_v20, %v2946_v15  ;;  %v1112_v39 = vadd.f32 %v1080_v43, %v1012_v33  ;;  %v2984_v9 = vld [vmem:[#allocation2 + $0xfc] sm:$0xff]  ;;  %v3731_v22 = vld [vmem:[#allocation69_spill] sm:$0xff]  ;;  %v3732_v20 = vld [vmem:[#allocation23_spill] sm:$0xff] }
  0xe9   : > { %v981_v50 = vmul.f32 %v2680_v41, %v945_v6  ;;  %v812_v23 = vadd.f32 %v780_v63, %v712_v26  ;;  %v713_v8 = vadd.f32 %v681_v58, %v613_v25  ;;  %v781_v36 = vmul.f32 %v2666_v61, %v745_v19  ;;  %v746_v40 = vld [vmem:[#allocation2 + $0xda] sm:$0xff]  ;;  %v1862_v58 = vld [vmem:[#allocation2 + $0x82] sm:$0xff] }
  0xea   : > { %1815 = vtanh.f32 %v1402_v59  ;;  %v1812_v42 = vpop.eup %1811  ;;  %v1559_v5 = vadd.f32 %v1861_v1, %v1495_v27  ;;  %v1339_v16 = vmul.f32 %v1307_v53, %v2946_v15  ;;  %v2970_v21 = vadd.f32 %v1180_v24, %v1112_v39 }
  0xeb   : > { %v1081_v43 = vmul.f32 %v2683_v47, %v2959_v46  ;;  %v1464_v38 = vadd.f32 1.0, %v1812_v42  ;;  %v912_v57 = vadd.f32 %v880_v44, %v812_v23  ;;  %v813_v12 = vadd.f32 %v781_v36, %v713_v8 }
  0xec   : > { %v881_v52 = vmul.f32 %v2669_v32, %v845_v28  ;;  %1591 = vst [vmem:[%s2863_s17 + $0x30] sm:$0xff] %v1559_v5  ;;  %v1371_v34 = vadd.f32 %v1339_v16, %v2946_v15  ;;  %v1276_v3 = vmul.f32 0.044715, %v2970_v21  ;;  %v1181_v63 = vmul.f32 %v2694_v4, %v2966_v0 }
  0xed   : > { %v982_v24 = vmul.f32 %v2680_v41, %v946_v29  ;;  %v1496_v6 = vmul.f32 %v1464_v38, %v2927_v56  ;;  %v1013_v14 = vadd.f32 %v981_v50, %v912_v57  ;;  %v514_v33 = vadd.f32 %v3732_v20, %v3731_v22  ;;  %v562_v56 = vld [vmem:[#allocation2 + $0x16c] sm:$0xff]  ;;  %v3733_v50 = vld [vmem:[#allocation81_spill] sm:$0xff]  ;;  %v846_v29 = vld [vmem:[#allocation2 + $0xdc] sm:$0xff] }
  0xee   : > { %v913_v18 = vadd.f32 %v881_v52, %v813_v12  ;;  %v1403_v44 = vmul.f32 0.7978846, %v1371_v34  ;;  %v1308_v19 = vmul.f32 %v1276_v3, %v2970_v21  ;;  %v1082_v59 = vmul.f32 %v2683_v47, %v2975_v30  ;;  %v947_v12 = vld [vmem:[#allocation2 + $0x108] sm:$0xff] }
  0xef   : > { %v682_v26 = vmul.f32 %v2650_v51, %v3717_v2  ;;  %v1560_v27 = vadd.f32 %v1862_v58, %v1496_v6  ;;  %v1113_v53 = vadd.f32 %v1081_v43, %v1013_v14  ;;  %v614_v28 = vadd.f32 %v3733_v50, %v514_v33  ;;  %v1863_v6 = vld [vmem:[#allocation2 + $0x92] sm:$0xff] }
  0xf0   : > { %v1814_v25 = vpop.eup %1813  ;;  %v1014_v39 = vadd.f32 %v982_v24, %v913_v18  ;;  %1817 = vtanh.f32 %v1403_v44  ;;  %v1340_v8 = vmul.f32 %v1308_v19, %v2970_v21  ;;  %v1182_v36 = vmul.f32 %v2694_v4, %v2984_v9  ;;  %v3008_v24 = vld [vmem:[#allocation2 + $0x10a] sm:$0xff] }
  0xf1   : > { %v1465_v23 = vadd.f32 1.0, %v1814_v25  ;;  %1592 = vst [vmem:[%s2863_s17 + $0x38] sm:$0xff] %v1560_v27  ;;  %v1213_v42 = vadd.f32 %v1181_v63, %v1113_v53  ;;  %v714_v1 = vadd.f32 %v682_v26, %v614_v28  ;;  %v782_v5 = vmul.f32 %v2666_v61, %v746_v40  ;;  %v3735_v20 = vld [vmem:[#allocation24_spill] sm:$0xff]  ;;  %v747_v40 = vld [vmem:[#allocation2 + $0xe2] sm:$0xff] }
  0xf2   : > { %v1114_v2 = vadd.f32 %v1082_v59, %v1014_v39  ;;  %v3000_v16 = vmul.f32 %v2184_v17, %v562_v56  ;;  %v1242_v38 = vmul.f32 0.5, %v2918_v7  ;;  %v1372_v57 = vadd.f32 %v1340_v8, %v2970_v21  ;;  %v3015_v26 = vld [vmem:[#allocation2 + $0x10c] sm:$0xff]  ;;  %v3736_v56 = vld [vmem:[#allocation87_spill] sm:$0xff] }
  0xf3   : > { %v1497_v43 = vmul.f32 %v1465_v23, %v2939_v10  ;;  %v1277_v52 = vmul.f32 0.044715, %v1213_v42  ;;  %v814_v3 = vadd.f32 %v782_v5, %v714_v1  ;;  %v882_v63 = vmul.f32 %v2669_v32, %v846_v29  ;;  %v3734_v10 = vld [vmem:[#allocation70_spill] sm:$0xff]  ;;  %v847_v23 = vld [vmem:[#allocation2 + $0xe4] sm:$0xff] }
  0xf4   : > { %v3005_v34 = vadd.f32 %v1182_v36, %v1114_v2  ;;  %v1243_v18 = vmul.f32 0.5, %v2946_v15  ;;  %v1404_v22 = vmul.f32 0.7978846, %v1372_v57  ;;  %v515_v7 = vadd.f32 %v3735_v20, %v3734_v10  ;;  %v1530_v8 = vld [vmem:[%s2152_s29 + $0x48] sm:$0xff] }
  0xf5   : > { %v1561_v14 = vadd.f32 %v1863_v6, %v1497_v43  ;;  %v1309_v33 = vmul.f32 %v1277_v52, %v1213_v42  ;;  %v914_v19 = vadd.f32 %v882_v63, %v814_v3  ;;  %v983_v59 = vmul.f32 %v2680_v41, %v947_v12  ;;  %v948_v12 = vld [vmem:[#allocation2 + $0x110] sm:$0xff]  ;;  %v3737_v6 = vld [vmem:[#allocation74_spill] sm:$0xff] }
  0xf6   : > { %v1278_v44 = vmul.f32 0.044715, %v3005_v34  ;;  %1819 = vtanh.f32 %v1404_v22  ;;  %v1083_v15 = vmul.f32 %v2683_v47, %v3008_v24  ;;  %v615_v58 = vadd.f32 %v3736_v56, %v515_v7 }
  0xf7   : > { %v1816_v25 = vpop.eup %1815  ;;  %1593 = vst [vmem:[%s2863_s17 + $0x40] sm:$0xff] %v1561_v14  ;;  %v683_v27 = vmul.f32 %v2650_v51, %v3725_v31  ;;  %v1341_v39 = vmul.f32 %v1309_v33, %v1213_v42  ;;  %v1015_v28 = vadd.f32 %v983_v59, %v914_v19  ;;  %v3026_v36 = vmul.f32 0.5, %v2970_v21  ;;  %v3035_v21 = vld [vmem:[#allocation2 + $0x112] sm:$0xff]  ;;  %v3738_v14 = vld [vmem:[#allocation39_spill] sm:$0xff] }
  0xf8   : > { %v1466_v53 = vadd.f32 1.0, %v1816_v25  ;;  %v1310_v50 = vmul.f32 %v1278_v44, %v3005_v34  ;;  %v1183_v29 = vmul.f32 %v2694_v4, %v3015_v26  ;;  %v783_v1 = vmul.f32 %v2666_v61, %v747_v40  ;;  %v3739_v19 = vld [vmem:[#allocation88_spill] sm:$0xff] }
  0xf9   : > { %v715_v2 = vadd.f32 %v683_v27, %v615_v58  ;;  %v1373_v43 = vadd.f32 %v1341_v39, %v1213_v42  ;;  %v1115_v57 = vadd.f32 %v1083_v15, %v1015_v28  ;;  %v3032_v52 = vmul.f32 0.5, %v1213_v42  ;;  %v3043_v42 = vld [vmem:[#allocation2 + $0x114] sm:$0xff]  ;;  %v3740_v40 = vld [vmem:[#allocation72_spill] sm:$0xff] }
  0xfa   : > { %v1498_v5 = vmul.f32 %v1466_v53, %v1242_v38  ;;  %v1342_v31 = vmul.f32 %v1310_v50, %v3005_v34  ;;  %v883_v63 = vmul.f32 %v2669_v32, %v847_v23  ;;  %v516_v22 = vadd.f32 %v3738_v14, %v3737_v6  ;;  %v1531_v23 = vld [vmem:[%s2152_s29 + $0x50] sm:$0xff]  ;;  %v3068_v14 = vld [vmem:[#allocation2 + $0x124] sm:$0xff] }
  0xfb   : > { %v815_v3 = vadd.f32 %v783_v1, %v715_v2  ;;  %v1405_v20 = vmul.f32 0.7978846, %v1373_v43  ;;  %v3040_v7 = vadd.f32 %v1183_v29, %v1115_v57  ;;  %v984_v44 = vmul.f32 %v2680_v41, %v948_v12  ;;  %v949_v2 = vld [vmem:[#allocation2 + $0x120] sm:$0xff] }
  0xfc   : > { %v1562_v10 = vadd.f32 %v1530_v8, %v1498_v5  ;;  %v1374_v38 = vadd.f32 %v1342_v31, %v3005_v34  ;;  %v616_v59 = vadd.f32 %v3739_v19, %v516_v22  ;;  %v684_v25 = vmul.f32 %v2650_v51, %v3740_v40  ;;  %v3741_v1 = vld [vmem:[#allocation75_spill] sm:$0xff]  ;;  %v3742_v5 = vld [vmem:[#allocation40_spill] sm:$0xff]  ;;  %v3743_v22 = vld [vmem:[#allocation89_spill] sm:$0xff] }
  0xfd   : > { %v915_v33 = vadd.f32 %v883_v63, %v815_v3  ;;  %v1818_v15 = vpop.eup %1817  ;;  %1821 = vtanh.f32 %v1405_v20  ;;  %v1279_v58 = vmul.f32 0.044715, %v3040_v7  ;;  %v1084_v27 = vmul.f32 %v2683_v47, %v3035_v21  ;;  %v3062_v63 = vld [vmem:[#allocation2 + $0x122] sm:$0xff]  ;;  %v1864_v20 = vld [vmem:[#allocation2 + $0xf8] sm:$0xff] }
  0xfe   : > { %1594 = vst [vmem:[%s2863_s17 + $0x48] sm:$0xff] %v1562_v10  ;;  %v1406_v56 = vmul.f32 0.7978846, %v1374_v38  ;;  %v1467_v53 = vadd.f32 1.0, %v1818_v15  ;;  %v716_v50 = vadd.f32 %v684_v25, %v616_v59  ;;  %v784_v28 = vmul.f32 %v2959_v46, %v2666_v61  ;;  %v950_v15 = vld [vmem:[#allocation2 + $0x128] sm:$0xff] }
  0xff   : > { %v1016_v39 = vadd.f32 %v984_v44, %v915_v33  ;;  %v1311_v8 = vmul.f32 %v1279_v58, %v3040_v7  ;;  %v1184_v29 = vmul.f32 %v2694_v4, %v3043_v42  ;;  %v517_v43 = vadd.f32 %v3742_v5, %v3741_v1 }
 0x100   : > { %1823 = vtanh.f32 %v1406_v56  ;;  %v1499_v31 = vmul.f32 %v1467_v53, %v1243_v18  ;;  %v816_v12 = vadd.f32 %v784_v28, %v716_v50  ;;  %v884_v3 = vmul.f32 %v2966_v0, %v2669_v32 }
 0x101   : > { %v1116_v57 = vadd.f32 %v1084_v27, %v1016_v39  ;;  %v3065_v46 = vmul.f32 0.5, %v3005_v34  ;;  %v1343_v6 = vmul.f32 %v1311_v8, %v3040_v7  ;;  %v617_v10 = vadd.f32 %v3743_v22, %v517_v43  ;;  %v1532_v39 = vld [vmem:[%s2152_s29 + $0x58] sm:$0xff]  ;;  %v3087_v8 = vld [vmem:[#allocation2 + $0x12a] sm:$0xff] }
 0x102   : > { %v685_v18 = vmul.f32 %v1864_v20, %v2650_v51  ;;  %v1563_v38 = vadd.f32 %v1531_v23, %v1499_v31  ;;  %v916_v0 = vadd.f32 %v884_v3, %v816_v12  ;;  %v985_v44 = vmul.f32 %v2680_v41, %v949_v2  ;;  %v3745_v2 = vld [vmem:[#allocation41_spill] sm:$0xff]  ;;  %v3746_v3 = vld [vmem:[#allocation90_spill] sm:$0xff] }
 0x103   : > { %v3072_v33 = vadd.f32 %v1184_v29, %v1116_v57  ;;  %v1820_v19 = vpop.eup %1819  ;;  %v1375_v34 = vadd.f32 %v1343_v6, %v3040_v7  ;;  %v1085_v59 = vmul.f32 %v2683_v47, %v3062_v63  ;;  %v785_v25 = vmul.f32 %v2975_v30, %v2666_v61  ;;  %v3744_v29 = vld [vmem:[#allocation82_spill] sm:$0xff]  ;;  %v3094_v57 = vld [vmem:[#allocation2 + $0x12c] sm:$0xff] }
 0x104   : > { %v717_v40 = vadd.f32 %v685_v18, %v617_v10  ;;  %1595 = vst [vmem:[%s2863_s17 + $0x50] sm:$0xff] %v1563_v38  ;;  %v1468_v56 = vadd.f32 1.0, %v1820_v19  ;;  %v1017_v27 = vadd.f32 %v985_v44, %v916_v0  ;;  %v1185_v53 = vmul.f32 %v2694_v4, %v3068_v14  ;;  %v951_v38 = vld [vmem:[#allocation2 + $0x138] sm:$0xff] }
 0x105   : > { %v1280_v58 = vmul.f32 0.044715, %v3072_v33  ;;  %v1407_v50 = vmul.f32 0.7978846, %v1375_v34  ;;  %v885_v23 = vmul.f32 %v2984_v9, %v2669_v32  ;;  %v518_v30 = vadd.f32 %v3745_v2, %v3744_v29  ;;  %v1865_v9 = vld [vmem:[#allocation2 + $0x108] sm:$0xff] }
 0x106   : > { %v817_v28 = vadd.f32 %v785_v25, %v717_v40  ;;  %v1500_v1 = vmul.f32 %v1468_v56, %v3026_v36  ;;  %v1117_v43 = vadd.f32 %v1085_v59, %v1017_v27  ;;  %v986_v31 = vmul.f32 %v2680_v41, %v950_v15  ;;  %v3747_v56 = vld [vmem:[#allocation83_spill] sm:$0xff] }
 0x107   : > { %v1312_v5 = vmul.f32 %v1280_v58, %v3072_v33  ;;  %1825 = vtanh.f32 %v1407_v50  ;;  %v618_v6 = vadd.f32 %v3746_v3, %v518_v30  ;;  %v686_v22 = vmul.f32 %v1865_v9, %v2650_v51  ;;  %v3748_v58 = vld [vmem:[#allocation42_spill] sm:$0xff] }
 0x108   : > { %v917_v12 = vadd.f32 %v885_v23, %v817_v28  ;;  %v1564_v10 = vadd.f32 %v1532_v39, %v1500_v1  ;;  %v3099_v18 = vadd.f32 %v1185_v53, %v1117_v43  ;;  %v1086_v36 = vmul.f32 %v2683_v47, %v3087_v8  ;;  %v3117_v30 = vld [vmem:[#allocation2 + $0x13a] sm:$0xff] }
 0x109   : > { %v1344_v20 = vmul.f32 %v1312_v5, %v3072_v33  ;;  %v1186_v44 = vmul.f32 %v2694_v4, %v3094_v57  ;;  %v718_v19 = vadd.f32 %v686_v22, %v618_v6  ;;  %v786_v34 = vmul.f32 %v3008_v24, %v2666_v61  ;;  %v1533_v24 = vld [vmem:[%s2152_s29 + $0x60] sm:$0xff]  ;;  %v1866_v5 = vld [vmem:[#allocation2 + $0x110] sm:$0xff]  ;;  %v1534_v6 = vld [vmem:[%s2152_s29 + $0x68] sm:$0xff] }
 0x10a   : > { %v1018_v0 = vadd.f32 %v986_v31, %v917_v12  ;;  %v1822_v59 = vpop.eup %1821  ;;  %1596 = vst [vmem:[%s2863_s17 + $0x58] sm:$0xff] %v1564_v10  ;;  %v1281_v25 = vmul.f32 0.044715, %v3099_v18  ;;  %v886_v15 = vmul.f32 %v3015_v26, %v2669_v32  ;;  %v519_v27 = vadd.f32 %v3748_v58, %v3747_v56  ;;  %v3126_v22 = vld [vmem:[#allocation2 + $0x13c] sm:$0xff] }
 0x10b   : > { %v1376_v40 = vadd.f32 %v1344_v20, %v3072_v33  ;;  %v1469_v53 = vadd.f32 1.0, %v1822_v59  ;;  %v818_v50 = vadd.f32 %v786_v34, %v718_v19  ;;  %v987_v28 = vmul.f32 %v2680_v41, %v951_v38  ;;  %v952_v20 = vld [vmem:[#allocation2 + $0x140] sm:$0xff] }
 0x10c   : > { %v1118_v39 = vadd.f32 %v1086_v36, %v1018_v0  ;;  %v1313_v2 = vmul.f32 %v1281_v25, %v3099_v18  ;;  %v619_v1 = vadd.f32 %v2641_v37, %v519_v27  ;;  %v687_v26 = vmul.f32 %v1866_v5, %v2650_v51 }
 0x10d   : > { %v1824_v23 = vpop.eup %1823  ;;  %v1408_v29 = vmul.f32 0.7978846, %v1376_v40  ;;  %v1501_v43 = vmul.f32 %v1469_v53, %v3032_v52  ;;  %v918_v3 = vadd.f32 %v886_v15, %v818_v50  ;;  %v787_v37 = vmul.f32 %v3035_v21, %v2666_v61  ;;  %v3137_v40 = vld [vmem:[#allocation2 + $0x142] sm:$0xff] }
 0x10e   : > { %v1470_v31 = vadd.f32 1.0, %v1824_v23  ;;  %v3122_v12 = vadd.f32 %v1186_v44, %v1118_v39  ;;  %v1345_v9 = vmul.f32 %v1313_v2, %v3099_v18  ;;  %v719_v10 = vadd.f32 %v687_v26, %v619_v1  ;;  %v3144_v53 = vld [vmem:[#allocation2 + $0x144] sm:$0xff]  ;;  %v3749_v39 = vld [vmem:[#allocation85_spill] sm:$0xff]  ;;  %v3750_v50 = vld [vmem:[#allocation30_spill] sm:$0xff] }
 0x10f   : > { %1827 = vtanh.f32 %v1408_v29  ;;  %v1565_v36 = vadd.f32 %v1533_v24, %v1501_v43  ;;  %v1087_v0 = vmul.f32 %v2683_v47, %v3117_v30  ;;  %v1019_v19 = vadd.f32 %v987_v28, %v918_v3  ;;  %v1867_v29 = vld [vmem:[#allocation2 + $0x120] sm:$0xff] }
 0x110   : > { %v1502_v38 = vmul.f32 %v1470_v31, %v3065_v46  ;;  %v1282_v52 = vmul.f32 0.044715, %v3122_v12  ;;  %v1377_v44 = vadd.f32 %v1345_v9, %v3099_v18  ;;  %v819_v34 = vadd.f32 %v787_v37, %v719_v10  ;;  %v1535_v9 = vld [vmem:[%s2152_s29 + $0x70] sm:$0xff] }
 0x111   : > { %v887_v59 = vmul.f32 %v3043_v42, %v2669_v32  ;;  %1597 = vst [vmem:[%s2863_s17 + $0x60] sm:$0xff] %v1565_v36  ;;  %v1187_v46 = vmul.f32 %v2694_v4, %v3126_v22  ;;  %v988_v15 = vmul.f32 %v2680_v41, %v952_v20  ;;  %v1119_v58 = vadd.f32 %v1087_v0, %v1019_v19  ;;  %v953_v0 = vld [vmem:[#allocation2 + $0x150] sm:$0xff] }
 0x112   : > { %v1566_v21 = vadd.f32 %v1534_v6, %v1502_v38  ;;  %v1314_v25 = vmul.f32 %v1282_v52, %v3122_v12  ;;  %v1409_v56 = vmul.f32 0.7978846, %v1377_v44  ;;  %v520_v28 = vadd.f32 %v3750_v50, %v3749_v39  ;;  %v3752_v44 = vld [vmem:[#allocation31_spill] sm:$0xff] }
 0x113   : > { %v919_v27 = vadd.f32 %v887_v59, %v819_v34  ;;  %v1247_v42 = vmul.f32 0.5, %v3040_v7  ;;  %v1088_v24 = vmul.f32 %v2683_v47, %v3137_v40  ;;  %v688_v2 = vmul.f32 %v1867_v29, %v2650_v51 }
 0x114   : > { %1598 = vst [vmem:[%s2863_s17 + $0x68] sm:$0xff] %v1566_v21  ;;  %v1346_v23 = vmul.f32 %v1314_v25, %v3122_v12  ;;  %v1826_v1 = vpop.eup %1825  ;;  %1829 = vtanh.f32 %v1409_v56  ;;  %v3154_v5 = vadd.f32 %v1187_v46, %v1119_v58  ;;  %v620_v43 = vadd.f32 %v2644_v49, %v520_v28  ;;  %v3175_v46 = vld [vmem:[#allocation2 + $0x152] sm:$0xff] }
 0x115   : > { %v1020_v26 = vadd.f32 %v988_v15, %v919_v27  ;;  %v1471_v31 = vadd.f32 1.0, %v1826_v1  ;;  %v1248_v3 = vmul.f32 0.5, %v3072_v33  ;;  %v1188_v6 = vmul.f32 %v2694_v4, %v3144_v53  ;;  %v3751_v33 = vld [vmem:[#allocation86_spill] sm:$0xff]  ;;  %v1868_v15 = vld [vmem:[#allocation2 + $0x128] sm:$0xff]  ;;  %v3182_v28 = vld [vmem:[#allocation2 + $0x154] sm:$0xff] }
 0x116   : > { %v1378_v7 = vadd.f32 %v1346_v23, %v3122_v12  ;;  %v1283_v10 = vmul.f32 0.044715, %v3154_v5  ;;  %v720_v20 = vadd.f32 %v688_v2, %v620_v43  ;;  %v788_v36 = vmul.f32 %v3062_v63, %v2666_v61  ;;  %v954_v43 = vld [vmem:[#allocation2 + $0x158] sm:$0xff] }
 0x117   : > { %v1120_v37 = vadd.f32 %v1088_v24, %v1020_v26  ;;  %v1503_v38 = vmul.f32 %v1471_v31, %v1247_v42  ;;  %v3166_v52 = vmul.f32 0.5, %v3099_v18  ;;  %v521_v19 = vadd.f32 %v3752_v44, %v3751_v33  ;;  %v1536_v31 = vld [vmem:[%s2152_s29 + $0x78] sm:$0xff] }
 0x118   : > { %v1410_v49 = vmul.f32 0.7978846, %v1378_v7  ;;  %v1315_v34 = vmul.f32 %v1283_v10, %v3154_v5  ;;  %v820_v21 = vadd.f32 %v788_v36, %v720_v20  ;;  %v888_v25 = vmul.f32 %v3068_v14, %v2669_v32  ;;  %v3754_v10 = vld [vmem:[#allocation32_spill] sm:$0xff]  ;;  %v3205_v44 = vld [vmem:[#allocation2 + $0x15c] sm:$0xff] }
 0x119   : > { %v3171_v59 = vadd.f32 %v1188_v6, %v1120_v37  ;;  %v1567_v63 = vadd.f32 %v1535_v9, %v1503_v38  ;;  %v621_v18 = vadd.f32 %v2653_v13, %v521_v19  ;;  %v689_v56 = vmul.f32 %v1868_v15, %v2650_v51  ;;  %v3753_v9 = vld [vmem:[#allocation91_spill] sm:$0xff] }
 0x11a   : > { %1831 = vtanh.f32 %v1410_v49  ;;  %v1347_v58 = vmul.f32 %v1315_v34, %v3154_v5  ;;  %v920_v39 = vadd.f32 %v888_v25, %v820_v21  ;;  %v989_v50 = vmul.f32 %v2680_v41, %v953_v0  ;;  %v3202_v49 = vld [vmem:[#allocation2 + $0x15a] sm:$0xff] }
 0x11b   : > { %v1284_v27 = vmul.f32 0.044715, %v3171_v59  ;;  %1599 = vst [vmem:[%s2863_s17 + $0x70] sm:$0xff] %v1567_v63  ;;  %v3186_v42 = vmul.f32 0.5, %v3122_v12  ;;  %v1089_v13 = vmul.f32 %v2683_v47, %v3175_v46  ;;  %v721_v23 = vadd.f32 %v689_v56, %v621_v18  ;;  %v1869_v34 = vld [vmem:[#allocation2 + $0x138] sm:$0xff] }
 0x11c   : > { %v1828_v14 = vpop.eup %1827  ;;  %v789_v24 = vmul.f32 %v3087_v8, %v2666_v61  ;;  %v1379_v2 = vadd.f32 %v1347_v58, %v3154_v5  ;;  %v1021_v26 = vadd.f32 %v989_v50, %v920_v39  ;;  %v1189_v7 = vmul.f32 %v2694_v4, %v3182_v28 }
 0x11d   : > { %v1472_v29 = vadd.f32 1.0, %v1828_v14  ;;  %v1316_v1 = vmul.f32 %v1284_v27, %v3171_v59  ;;  %v889_v6 = vmul.f32 %v3094_v57, %v2669_v32  ;;  %v522_v37 = vadd.f32 %v3754_v10, %v3753_v9  ;;  %v955_v14 = vld [vmem:[#allocation2 + $0x168] sm:$0xff]  ;;  %v3757_v10 = vld [vmem:[#allocation101_spill] sm:$0xff] }
 0x11e   : > { %v821_v12 = vadd.f32 %v789_v24, %v721_v23  ;;  %v1411_v8 = vmul.f32 0.7978846, %v1379_v2  ;;  %v1121_v38 = vadd.f32 %v1089_v13, %v1021_v26  ;;  %v990_v33 = vmul.f32 %v2680_v41, %v954_v43  ;;  %v1537_v13 = vld [vmem:[%s2152_s29 + $0x80] sm:$0xff]  ;;  %v3755_v2 = vld [vmem:[#allocation92_spill] sm:$0xff] }
 0x11f   : > { %v1504_v20 = vmul.f32 %v1472_v29, %v1248_v3  ;;  %v1348_v36 = vmul.f32 %v1316_v1, %v3171_v59  ;;  %v622_v19 = vadd.f32 %v2656_v62, %v522_v37  ;;  %v690_v57 = vmul.f32 %v1869_v34, %v2650_v51  ;;  %v3756_v1 = vld [vmem:[#allocation33_spill] sm:$0xff] }
 0x120   : > { %v921_v0 = vadd.f32 %v889_v6, %v821_v12  ;;  %1833 = vtanh.f32 %v1411_v8  ;;  %v3210_v25 = vadd.f32 %v1189_v7, %v1121_v38  ;;  %v1090_v15 = vmul.f32 %v2683_v47, %v3202_v49  ;;  %v3228_v7 = vld [vmem:[#allocation2 + $0x16a] sm:$0xff] }
 0x121   : > { %v1568_v21 = vadd.f32 %v1536_v31, %v1504_v20  ;;  %v1380_v3 = vadd.f32 %v1348_v36, %v3171_v59  ;;  %v1830_v63 = vpop.eup %1829  ;;  %v722_v56 = vadd.f32 %v690_v57, %v622_v19  ;;  %v790_v58 = vmul.f32 %v3117_v30, %v2666_v61  ;;  %v1870_v36 = vld [vmem:[#allocation2 + $0x140] sm:$0xff]  ;;  %v1538_v57 = vld [vmem:[%s2152_s29 + $0x88] sm:$0xff] }
 0x122   : > { %v1022_v18 = vadd.f32 %v990_v33, %v921_v0  ;;  %v1473_v62 = vadd.f32 1.0, %v1830_v63  ;;  %v1285_v39 = vmul.f32 0.044715, %v3210_v25  ;;  %v1190_v50 = vmul.f32 %v2694_v4, %v3205_v44 }
 0x123   : > { %1600 = vst [vmem:[%s2863_s17 + $0x78] sm:$0xff] %v1568_v21  ;;  %v1412_v27 = vmul.f32 0.7978846, %v1380_v3  ;;  %v822_v24 = vadd.f32 %v790_v58, %v722_v56  ;;  %v890_v29 = vmul.f32 %v3126_v22, %v2669_v32  ;;  %v523_v26 = vadd.f32 %v3756_v1, %v3755_v2  ;;  %v3233_v22 = vld [vmem:[#allocation2 + $0x16c] sm:$0xff]  ;;  %v3263_v1 = vld [vmem:[#allocation2 + $0x174] sm:$0xff] }
 0x124   : > { %v1122_v23 = vadd.f32 %v1090_v15, %v1022_v18  ;;  %v1505_v30 = vmul.f32 %v1473_v62, %v3166_v52  ;;  %v1251_v43 = vmul.f32 0.5, %v3154_v5  ;;  %v1317_v31 = vmul.f32 %v1285_v39, %v3210_v25  ;;  %v956_v58 = vld [vmem:[#allocation2 + $0x170] sm:$0xff]  ;;  %v3759_v39 = vld [vmem:[#allocation34_spill] sm:$0xff] }
 0x125   : > { %1835 = vtanh.f32 %v1412_v27  ;;  %v922_v6 = vadd.f32 %v890_v29, %v822_v24  ;;  %v991_v9 = vmul.f32 %v2680_v41, %v955_v14  ;;  %v623_v37 = vadd.f32 %v3757_v10, %v523_v26  ;;  %v3253_v62 = vld [vmem:[#allocation2 + $0x172] sm:$0xff]  ;;  %v3760_v26 = vld [vmem:[#allocation102_spill] sm:$0xff] }
 0x126   : > { %v3230_v12 = vadd.f32 %v1190_v50, %v1122_v23  ;;  %v1569_v52 = vadd.f32 %v1537_v13, %v1505_v30  ;;  %v3237_v5 = vmul.f32 0.5, %v3171_v59  ;;  %v1349_v8 = vmul.f32 %v1317_v31, %v3210_v25  ;;  %v3758_v27 = vld [vmem:[#allocation93_spill] sm:$0xff] }
 0x127   : > { %v1832_v20 = vpop.eup %1831  ;;  %v691_v38 = vmul.f32 %v1870_v36, %v2650_v51  ;;  %v1023_v19 = vadd.f32 %v991_v9, %v922_v6  ;;  %v1091_v34 = vmul.f32 %v2683_v47, %v3228_v7  ;;  %v1191_v59 = vmul.f32 %v2694_v4, %v3233_v22  ;;  %v1871_v24 = vld [vmem:[#allocation2 + $0x150] sm:$0xff] }
 0x128   : > { %v1474_v0 = vadd.f32 1.0, %v1832_v20  ;;  %v1286_v33 = vmul.f32 0.044715, %v3230_v12  ;;  %1601 = vst [vmem:[%s2863_s17 + $0x80] sm:$0xff] %v1569_v52  ;;  %v1381_v21 = vadd.f32 %v1349_v8, %v3210_v25  ;;  %v791_v63 = vmul.f32 %v3137_v40, %v2666_v61  ;;  %v957_v8 = vld [vmem:[#allocation2 + $0x180] sm:$0xff] }
 0x129   : > { %v723_v3 = vadd.f32 %v691_v38, %v623_v37  ;;  %v1123_v56 = vadd.f32 %v1091_v34, %v1023_v19  ;;  %v524_v50 = vadd.f32 %v3759_v39, %v3758_v27  ;;  %v891_v23 = vmul.f32 %v3144_v53, %v2669_v32  ;;  %v1539_v19 = vld [vmem:[%s2152_s29 + $0x90] sm:$0xff] }
 0x12a   : > { %v1506_v18 = vmul.f32 %v1474_v0, %v3186_v42  ;;  %v1318_v15 = vmul.f32 %v1286_v33, %v3230_v12  ;;  %v1413_v14 = vmul.f32 0.7978846, %v1381_v21  ;;  %v692_v40 = vmul.f32 %v1871_v24, %v2650_v51 }
 0x12b   : > { %v823_v13 = vadd.f32 %v791_v63, %v723_v3  ;;  %v3261_v2 = vadd.f32 %v1191_v59, %v1123_v56  ;;  %v624_v30 = vadd.f32 %v3760_v26, %v524_v50  ;;  %v992_v6 = vmul.f32 %v2680_v41, %v956_v58  ;;  %v3280_v59 = vld [vmem:[#allocation2 + $0x182] sm:$0xff]  ;;  %v1872_v58 = vld [vmem:[#allocation2 + $0x158] sm:$0xff] }
 0x12c   : > { %v1570_v29 = vadd.f32 %v1538_v57, %v1506_v18  ;;  %v1350_v42 = vmul.f32 %v1318_v15, %v3230_v12  ;;  %1837 = vtanh.f32 %v1413_v14  ;;  %v1092_v53 = vmul.f32 %v2683_v47, %v3253_v62  ;;  %v3761_v3 = vld [vmem:[#allocation94_spill] sm:$0xff]  ;;  %v3762_v63 = vld [vmem:[#allocation35_spill] sm:$0xff] }
 0x12d   : > { %v923_v31 = vadd.f32 %v891_v23, %v823_v13  ;;  %v1834_v9 = vpop.eup %1833  ;;  %v1287_v37 = vmul.f32 0.044715, %v3261_v2  ;;  %v724_v20 = vadd.f32 %v692_v40, %v624_v30  ;;  %v792_v52 = vmul.f32 %v3175_v46, %v2666_v61  ;;  %v3287_v13 = vld [vmem:[#allocation2 + $0x184] sm:$0xff]  ;;  %v1540_v26 = vld [vmem:[%s2152_s29 + $0x98] sm:$0xff] }
 0x12e   : > { %1602 = vst [vmem:[%s2863_s17 + $0x88] sm:$0xff] %v1570_v29  ;;  %v1382_v10 = vadd.f32 %v1350_v42, %v3230_v12  ;;  %v1475_v36 = vadd.f32 1.0, %v1834_v9  ;;  %v1192_v0 = vmul.f32 %v2694_v4, %v3263_v1  ;;  %v892_v33 = vmul.f32 %v3182_v28, %v2669_v32  ;;  %v563_v28 = vld [vmem:[#allocation2 + $0x174] sm:$0xff]  ;;  %v3763_v23 = vld [vmem:[#allocation103_spill] sm:$0xff] }
 0x12f   : > { %v1024_v38 = vadd.f32 %v992_v6, %v923_v31  ;;  %v1319_v57 = vmul.f32 %v1287_v37, %v3261_v2  ;;  %v824_v21 = vadd.f32 %v792_v52, %v724_v20  ;;  %v525_v18 = vadd.f32 %v3762_v63, %v3761_v3  ;;  %v958_v52 = vld [vmem:[#allocation2 + $0x188] sm:$0xff] }
 0x130   : > { %v1414_v34 = vmul.f32 0.7978846, %v1382_v10  ;;  %v1507_v46 = vmul.f32 %v1475_v36, %v1251_v43  ;;  %v993_v56 = vmul.f32 %v2680_v41, %v957_v8  ;;  %v693_v27 = vmul.f32 %v1872_v58, %v2650_v51 }
 0x131   : > { %v1124_v15 = vadd.f32 %v1092_v53, %v1024_v38  ;;  %v1351_v50 = vmul.f32 %v1319_v57, %v3261_v2  ;;  %v924_v14 = vadd.f32 %v892_v33, %v824_v21  ;;  %v625_v24 = vadd.f32 %v3763_v23, %v525_v18 }
 0x132   : > { %v1836_v39 = vpop.eup %1835  ;;  %1839 = vtanh.f32 %v1414_v34  ;;  %v1571_v40 = vadd.f32 %v1539_v19, %v1507_v46  ;;  %v1093_v42 = vmul.f32 %v2683_v47, %v3280_v59  ;;  %v793_v53 = vmul.f32 %v3202_v49, %v2666_v61  ;;  %v3310_v19 = vld [vmem:[#allocation2 + $0x18a] sm:$0xff] }
 0x133   : > { %v1476_v43 = vadd.f32 1.0, %v1836_v39  ;;  %v3290_v29 = vadd.f32 %v1192_v0, %v1124_v15  ;;  %v1383_v30 = vadd.f32 %v1351_v50, %v3261_v2  ;;  %v1025_v31 = vadd.f32 %v993_v56, %v924_v14  ;;  %v3765_v34 = vld [vmem:[#allocation36_spill] sm:$0xff] }
 0x134   : > { %v725_v6 = vadd.f32 %v693_v27, %v625_v24  ;;  %v3299_v9 = vmul.f32 %v2184_v17, %v563_v28  ;;  %1603 = vst [vmem:[%s2863_s17 + $0x90] sm:$0xff] %v1571_v40  ;;  %v1193_v20 = vmul.f32 %v2694_v4, %v3287_v13  ;;  %v893_v0 = vmul.f32 %v3205_v44, %v2669_v32  ;;  %v1873_v15 = vld [vmem:[#allocation2 + $0x168] sm:$0xff]  ;;  %v959_v24 = vld [vmem:[#allocation2 + $0x198] sm:$0xff]  ;;  %v1541_v40 = vld [vmem:[%s2152_s29 + $0xa0] sm:$0xff] }
 0x135   : > { %v1508_v10 = vmul.f32 %v1476_v43, %v3237_v5  ;;  %v1288_v37 = vmul.f32 0.044715, %v3290_v29  ;;  %v1415_v8 = vmul.f32 0.7978846, %v1383_v30  ;;  %v1125_v36 = vadd.f32 %v1093_v42, %v1025_v31  ;;  %v3764_v5 = vld [vmem:[#allocation100_spill] sm:$0xff] }
 0x136   : > { %v825_v38 = vadd.f32 %v793_v53, %v725_v6  ;;  %v1253_v17 = vmul.f32 0.5, %v3210_v25  ;;  %v526_v57 = vadd.f32 %v3765_v34, %v3764_v5  ;;  %v994_v63 = vmul.f32 %v2680_v41, %v958_v52  ;;  %v3320_v25 = vld [vmem:[#allocation2 + $0x18c] sm:$0xff] }
 0x137   : > { %v1572_v49 = vadd.f32 %v1540_v26, %v1508_v10  ;;  %v1320_v33 = vmul.f32 %v1288_v37, %v3290_v29  ;;  %1841 = vtanh.f32 %v1415_v8  ;;  %v3314_v21 = vadd.f32 %v1193_v20, %v1125_v36  ;;  %v3766_v26 = vld [vmem:[#allocation95_spill] sm:$0xff]  ;;  %v3341_v37 = vld [vmem:[#allocation2 + $0x19a] sm:$0xff] }
 0x138   : > { %v925_v3 = vadd.f32 %v893_v0, %v825_v38  ;;  %v1254_v18 = vmul.f32 0.5, %v3230_v12  ;;  %v626_v46 = vadd.f32 %v2720_v54, %v526_v57  ;;  %v694_v56 = vmul.f32 %v1873_v15, %v2650_v51  ;;  %v3347_v8 = vld [vmem:[#allocation2 + $0x19c] sm:$0xff] }
 0x139   : > { %1604 = vst [vmem:[%s2863_s17 + $0x98] sm:$0xff] %v1572_v49  ;;  %v1352_v44 = vmul.f32 %v1320_v33, %v3290_v29  ;;  %v1838_v58 = vpop.eup %1837  ;;  %v3325_v27 = vmul.f32 0.5, %v3261_v2  ;;  %v1289_v39 = vmul.f32 0.044715, %v3314_v21  ;;  %v1094_v12 = vmul.f32 %v2683_v47, %v3310_v19  ;;  %v1874_v49 = vld [vmem:[#allocation2 + $0x170] sm:$0xff] }
 0x13a   : > { %v1026_v28 = vadd.f32 %v994_v63, %v925_v3  ;;  %v1477_v50 = vadd.f32 1.0, %v1838_v58  ;;  %v726_v23 = vadd.f32 %v694_v56, %v626_v46  ;;  %v794_v54 = vmul.f32 %v3228_v7, %v2666_v61  ;;  %v1542_v3 = vld [vmem:[%s2152_s29 + $0xa8] sm:$0xff] }
 0x13b   : > { %v1384_v14 = vadd.f32 %v1352_v44, %v3290_v29  ;;  %v1321_v43 = vmul.f32 %v1289_v39, %v3314_v21  ;;  %v1194_v2 = vmul.f32 %v2694_v4, %v3320_v25  ;;  %v527_v30 = vadd.f32 %v3766_v26, %v2697_v45  ;;  %v960_v39 = vld [vmem:[#allocation2 + $0x1a0] sm:$0xff] }
 0x13c   : > { %v1126_v42 = vadd.f32 %v1094_v12, %v1026_v28  ;;  %v1509_v31 = vmul.f32 %v1477_v50, %v1253_v17  ;;  %v826_v53 = vadd.f32 %v794_v54, %v726_v23  ;;  %v894_v10 = vmul.f32 %v3233_v22, %v2669_v32  ;;  %v660_v17 = vld [vmem:[#allocation2 + $0x180] sm:$0xff]  ;;  %v3767_v12 = vld [vmem:[#allocation96_spill] sm:$0xff] }
 0x13d   : > { %v1416_v6 = vmul.f32 0.7978846, %v1384_v14  ;;  %v1353_v7 = vmul.f32 %v1321_v43, %v3314_v21  ;;  %v995_v52 = vmul.f32 %v2680_v41, %v959_v24  ;;  %v627_v45 = vadd.f32 %v2723_v55, %v527_v30  ;;  %v3362_v28 = vld [vmem:[#allocation2 + $0x1a2] sm:$0xff]  ;;  %v961_v43 = vld [vmem:[#allocation2 + $0x1b0] sm:$0xff] }
 0x13e   : > { %v3344_v20 = vadd.f32 %v1194_v2, %v1126_v42  ;;  %v1573_v38 = vadd.f32 %v1541_v40, %v1509_v31  ;;  %v926_v0 = vadd.f32 %v894_v10, %v826_v53  ;;  %v695_v22 = vmul.f32 %v1874_v49, %v2650_v51  ;;  %v3378_v53 = vld [vmem:[#allocation2 + $0x1a4] sm:$0xff] }
 0x13f   : > { %v1840_v36 = vpop.eup %1839  ;;  %1843 = vtanh.f32 %v1416_v6  ;;  %v1385_v5 = vadd.f32 %v1353_v7, %v3314_v21  ;;  %v1095_v57 = vmul.f32 %v2683_v47, %v3341_v37  ;;  %v1195_v55 = vmul.f32 %v2694_v4, %v3347_v8  ;;  %v1543_v7 = vld [vmem:[%s2152_s29 + $0xb0] sm:$0xff] }
 0x140   : > { %v1478_v33 = vadd.f32 1.0, %v1840_v36  ;;  %v1290_v34 = vmul.f32 0.044715, %v3344_v20  ;;  %1605 = vst [vmem:[%s2863_s17 + $0xa0] sm:$0xff] %v1573_v38  ;;  %v1027_v63 = vadd.f32 %v995_v52, %v926_v0  ;;  %v727_v44 = vadd.f32 %v695_v22, %v627_v45 }
 0x141   : > { %v795_v46 = vmul.f32 %v3253_v62, %v2666_v61  ;;  %v1417_v56 = vmul.f32 0.7978846, %v1385_v5  ;;  %v528_v50 = vadd.f32 %v3767_v12, %v2704_v60  ;;  %v895_v54 = vmul.f32 %v3263_v1, %v2669_v32  ;;  %v661_v1 = vld [vmem:[#allocation2 + $0x188] sm:$0xff] }
 0x142   : > { %v1510_v15 = vmul.f32 %v1478_v33, %v1254_v18  ;;  %v1322_v58 = vmul.f32 %v1290_v34, %v3344_v20  ;;  %v1127_v14 = vadd.f32 %v1095_v57, %v1027_v63  ;;  %v696_v24 = vmul.f32 %v2650_v51, %v660_v17  ;;  %v1061_v17 = vld [vmem:[#allocation2 + $0x1b2] sm:$0xff] }
 0x143   : > { %v827_v23 = vadd.f32 %v795_v46, %v727_v44  ;;  %1845 = vtanh.f32 %v1417_v56  ;;  %v628_v18 = vadd.f32 %v2730_v35, %v528_v50  ;;  %v996_v26 = vmul.f32 %v2680_v41, %v960_v39  ;;  %v3768_v33 = vld [vmem:[#allocation97_spill] sm:$0xff] }
 0x144   : > { %v1574_v40 = vadd.f32 %v1542_v3, %v1510_v15  ;;  %v1354_v62 = vmul.f32 %v1322_v58, %v3344_v20  ;;  %v1842_v42 = vpop.eup %1841  ;;  %v3371_v2 = vadd.f32 %v1195_v55, %v1127_v14  ;;  %v1096_v30 = vmul.f32 %v2683_v47, %v3362_v28  ;;  %v1161_v3 = vld [vmem:[#allocation2 + $0x1b4] sm:$0xff] }
 0x145   : > { %v927_v60 = vadd.f32 %v895_v54, %v827_v23  ;;  %v1479_v31 = vadd.f32 1.0, %v1842_v42  ;;  %v728_v10 = vadd.f32 %v696_v24, %v628_v18  ;;  %v796_v35 = vmul.f32 %v3280_v59, %v2666_v61  ;;  %v662_v58 = vld [vmem:[#allocation2 + $0x198] sm:$0xff] }
 0x146   : > { %1606 = vst [vmem:[%s2863_s17 + $0xa8] sm:$0xff] %v1574_v40  ;;  %v1386_v6 = vadd.f32 %v1354_v62, %v3344_v20  ;;  %v1291_v52 = vmul.f32 0.044715, %v3371_v2  ;;  %v896_v36 = vmul.f32 %v3287_v13, %v2669_v32  ;;  %v997_v38 = vmul.f32 %v2680_v41, %v961_v43  ;;  %v1062_v24 = vld [vmem:[#allocation2 + $0x1ba] sm:$0xff]  ;;  %v1875_v43 = vld [vmem:[#allocation2 + $0x8] sm:$0xff] }
 0x147   : > { %v1028_v45 = vadd.f32 %v996_v26, %v927_v60  ;;  %v1511_v0 = vmul.f32 %v1479_v31, %v3325_v27  ;;  %v828_v22 = vadd.f32 %v796_v35, %v728_v10  ;;  %v529_v5 = vadd.f32 %v3768_v33, %v2707_v11  ;;  %v1544_v40 = vld [vmem:[%s2152_s29 + $0xb8] sm:$0xff]  ;;  %v3769_v60 = vld [vmem:[#allocation104_spill] sm:$0xff] }
 0x148   : > { %v1418_v49 = vmul.f32 0.7978846, %v1386_v6  ;;  %v1323_v59 = vmul.f32 %v1291_v52, %v3371_v2  ;;  %v1196_v57 = vmul.f32 %v2694_v4, %v3378_v53  ;;  %v697_v13 = vmul.f32 %v2650_v51, %v661_v1  ;;  %v3770_v26 = vld [vmem:[#allocation98_spill] sm:$0xff] }
 0x149   : > { %v1128_v34 = vadd.f32 %v1096_v30, %v1028_v45  ;;  %v1575_v63 = vadd.f32 %v1543_v7, %v1511_v0  ;;  %v928_v55 = vadd.f32 %v896_v36, %v828_v22  ;;  %v629_v27 = vadd.f32 %v2899_v48, %v529_v5  ;;  %v1162_v6 = vld [vmem:[#allocation2 + $0x1bc] sm:$0xff] }
 0x14a   : > { %1847 = vtanh.f32 %v1418_v49  ;;  %v1256_v44 = vmul.f32 0.5, %v3290_v29  ;;  %v1355_v11 = vmul.f32 %v1323_v59, %v3371_v2  ;;  %v1097_v15 = vmul.f32 %v2683_v47, %v1061_v17  ;;  %v663_v49 = vld [vmem:[#allocation2 + $0x1a0] sm:$0xff]  ;;  %v963_v59 = vld [vmem:[#allocation2 + $0x1c8] sm:$0xff] }
 0x14b   : > { %v3397_v46 = vadd.f32 %v1196_v57, %v1128_v34  ;;  %1607 = vst [vmem:[%s2863_s17 + $0xb0] sm:$0xff] %v1575_v63  ;;  %v1029_v39 = vadd.f32 %v997_v38, %v928_v55  ;;  %v1197_v12 = vmul.f32 %v2694_v4, %v1161_v3  ;;  %v729_v50 = vadd.f32 %v697_v13, %v629_v27  ;;  %v1545_v34 = vld [vmem:[%s2152_s29 + $0xc0] sm:$0xff]  ;;  %v3771_v27 = vld [vmem:[#allocation105_spill] sm:$0xff] }
 0x14c   : > { %v1844_v56 = vpop.eup %1843  ;;  %v797_v14 = vmul.f32 %v3310_v19, %v2666_v61  ;;  %v1387_v29 = vadd.f32 %v1355_v11, %v3371_v2  ;;  %v897_v54 = vmul.f32 %v3320_v25, %v2669_v32  ;;  %v3410_v42 = vmul.f32 %v1875_v43, %v2680_v41 }
 0x14d   : > { %v1480_v48 = vadd.f32 1.0, %v1844_v56  ;;  %v1292_v23 = vmul.f32 0.044715, %v3397_v46  ;;  %v1129_v62 = vadd.f32 %v1097_v15, %v1029_v39  ;;  %v530_v30 = vadd.f32 %v3770_v26, %v3769_v60 }
 0x14e   : > { %v829_v18 = vadd.f32 %v797_v14, %v729_v50  ;;  %v1419_v1 = vmul.f32 0.7978846, %v1387_v29  ;;  %v698_v10 = vmul.f32 %v2650_v51, %v662_v58  ;;  %v1098_v7 = vmul.f32 %v2683_v47, %v1062_v24 }
 0x14f   : > { %v1512_v19 = vmul.f32 %v1480_v48, %v1256_v44  ;;  %v1324_v31 = vmul.f32 %v1292_v23, %v3397_v46  ;;  %v3416_v25 = vadd.f32 %v1197_v12, %v1129_v62  ;;  %v630_v52 = vadd.f32 %v3000_v16, %v530_v30  ;;  %v3772_v44 = vld [vmem:[#allocation99_spill] sm:$0xff] }
 0x150   : > { %v929_v35 = vadd.f32 %v897_v54, %v829_v18  ;;  %v1846_v45 = vpop.eup %1845  ;;  %v1257_v38 = vmul.f32 0.5, %v3314_v21  ;;  %1849 = vtanh.f32 %v1419_v1  ;;  %v1198_v5 = vmul.f32 %v2694_v4, %v1162_v6 }
 0x151   : > { %v1576_v36 = vadd.f32 %v1544_v40, %v1512_v19  ;;  %v1356_v0 = vmul.f32 %v1324_v31, %v3397_v46  ;;  %v1481_v22 = vadd.f32 1.0, %v1846_v45  ;;  %v1293_v17 = vmul.f32 0.044715, %v3416_v25  ;;  %v1546_v40 = vld [vmem:[%s2152_s29 + $0xc8] sm:$0xff] }
 0x152   : > { %v1030_v33 = vadd.f32 %v3410_v42, %v929_v35  ;;  %v730_v57 = vadd.f32 %v698_v10, %v630_v52  ;;  %v798_v21 = vmul.f32 %v3341_v37, %v2666_v61  ;;  %v898_v3 = vmul.f32 %v3347_v8, %v2669_v32  ;;  %v1063_v8 = vld [vmem:[#allocation2 + $0x1ca] sm:$0xff] }
 0x153   : > { %1608 = vst [vmem:[%s2863_s17 + $0xb8] sm:$0xff] %v1576_v36  ;;  %v1388_v16 = vadd.f32 %v1356_v0, %v3397_v46  ;;  %v1513_v13 = vmul.f32 %v1481_v22, %v1257_v38  ;;  %v1325_v63 = vmul.f32 %v1293_v17, %v3416_v25  ;;  %v531_v11 = vadd.f32 %v3772_v44, %v3771_v27  ;;  %v1164_v36 = vld [vmem:[#allocation2 + $0x1d4] sm:$0xff] }
 0x154   : > { %v1130_v55 = vadd.f32 %v1098_v7, %v1030_v33  ;;  %v830_v56 = vadd.f32 %v798_v21, %v730_v57  ;;  %v999_v58 = vmul.f32 %v2680_v41, %v963_v59  ;;  %v699_v39 = vmul.f32 %v2650_v51, %v663_v49  ;;  %v1163_v51 = vld [vmem:[#allocation2 + $0x1cc] sm:$0xff] }
 0x155   : > { %v1420_v15 = vmul.f32 0.7978846, %v1388_v16  ;;  %v1577_v12 = vadd.f32 %v1545_v34, %v1513_v13  ;;  %v1357_v37 = vmul.f32 %v1325_v63, %v3416_v25  ;;  %v631_v14 = vadd.f32 %v3299_v9, %v531_v11  ;;  %v1548_v13 = vld [vmem:[%s2152_s29 + $0xd8] sm:$0xff] }
 0x156   : > { %v3438_v50 = vadd.f32 %v1198_v5, %v1130_v55  ;;  %v930_v29 = vadd.f32 %v898_v3, %v830_v56  ;;  %v1258_v23 = vmul.f32 0.5, %v3344_v20  ;;  %v1099_v18 = vmul.f32 %v2683_v47, %v1063_v8  ;;  %v1064_v20 = vld [vmem:[#allocation2 + $0x1d2] sm:$0xff] }
 0x157   : > { %v1848_v48 = vpop.eup %1847  ;;  %1851 = vtanh.f32 %v1420_v15  ;;  %1609 = vst [vmem:[%s2863_s17 + $0xc0] sm:$0xff] %v1577_v12  ;;  %v1389_v41 = vadd.f32 %v1357_v37, %v3416_v25  ;;  %v731_v43 = vadd.f32 %v699_v39, %v631_v14  ;;  %v799_v9 = vmul.f32 %v3362_v28, %v2666_v61 }
 0x158   : > { %v1482_v54 = vadd.f32 1.0, %v1848_v48  ;;  %v1294_v24 = vmul.f32 0.044715, %v3438_v50  ;;  %v1031_v62 = vadd.f32 %v999_v58, %v930_v29  ;;  %v1199_v1 = vmul.f32 %v2694_v4, %v1163_v51  ;;  %v1549_v58 = vld [vmem:[%s2152_s29 + $0xe0] sm:$0xff]  ;;  %v1550_v29 = vld [vmem:[%s2152_s29 + $0xe8] sm:$0xff]  ;;  %v1551_v51 = vld [vmem:[%s2152_s29 + $0xf0] sm:$0xff] }
 0x159   : > { %v1421_v26 = vmul.f32 0.7978846, %v1389_v41  ;;  %v831_v31 = vadd.f32 %v799_v9, %v731_v43  ;;  %v899_v6 = vmul.f32 %v3378_v53, %v2669_v32  ;;  %v1100_v28 = vmul.f32 %v2683_v47, %v1064_v20  ;;  %v1547_v53 = vld [vmem:[%s2152_s29 + $0xd0] sm:$0xff]  ;;  %v1552_v9 = vld [vmem:[%s2152_s29 + $0xf8] sm:$0xff] }
 0x15a   : > { %v1514_v60 = vmul.f32 %v1482_v54, %v1258_v23  ;;  %v1326_v30 = vmul.f32 %v1294_v24, %v3438_v50  ;;  %v1131_v19 = vadd.f32 %v1099_v18, %v1031_v62  ;;  %v1259_v38 = vmul.f32 0.5, %v3371_v2 }
 0x15b   : > { %1853 = vtanh.f32 %v1421_v26  ;;  %v931_v61 = vadd.f32 %v899_v6, %v831_v31  ;;  %v1200_v47 = vmul.f32 %v2694_v4, %v1164_v36  ;;  %v1260_v2 = vmul.f32 0.5, %v3397_v46 }
 0x15c   : > { %v1578_v10 = vadd.f32 %v1546_v40, %v1514_v60  ;;  %v1358_v35 = vmul.f32 %v1326_v30, %v3438_v50  ;;  %v1231_v7 = vadd.f32 %v1199_v1, %v1131_v19  ;;  %v1261_v15 = vmul.f32 0.5, %v3416_v25 }
 0x15d   : > { %v1850_v52 = vpop.eup %1849  ;;  %v1032_v32 = vadd.f32 %v3410_v42, %v931_v61  ;;  %v1262_v14 = vmul.f32 0.5, %v3438_v50 }
 0x15e   : > { %1610 = vst [vmem:[%s2863_s17 + $0xc8] sm:$0xff] %v1578_v10  ;;  %v1390_v45 = vadd.f32 %v1358_v35, %v3438_v50  ;;  %v1483_v0 = vadd.f32 1.0, %v1850_v52  ;;  %v1295_v49 = vmul.f32 0.044715, %v1231_v7  ;;  %v1263_v41 = vmul.f32 0.5, %v1231_v7 }
 0x15f   : > { %v1132_v5 = vadd.f32 %v1100_v28, %v1032_v32 }
 0x160   : > { %v1422_v22 = vmul.f32 0.7978846, %v1390_v45  ;;  %v1515_v17 = vmul.f32 %v1483_v0, %v1259_v38  ;;  %v1327_v33 = vmul.f32 %v1295_v49, %v1231_v7 }
 0x161   : > { %v1232_v16 = vadd.f32 %v1200_v47, %v1132_v5 }
 0x162   : > { %1855 = vtanh.f32 %v1422_v22  ;;  %v1579_v59 = vadd.f32 %v1547_v53, %v1515_v17  ;;  %v1359_v34 = vmul.f32 %v1327_v33, %v1231_v7 }
 0x163   : > { %v1296_v3 = vmul.f32 0.044715, %v1232_v16  ;;  %v1264_v50 = vmul.f32 0.5, %v1232_v16 }
 0x164   : > { %v1852_v57 = vpop.eup %1851  ;;  %1611 = vst [vmem:[%s2863_s17 + $0xd0] sm:$0xff] %v1579_v59  ;;  %v1391_v42 = vadd.f32 %v1359_v34, %v1231_v7 }
 0x165   : > { %v1484_v21 = vadd.f32 1.0, %v1852_v57  ;;  %v1328_v27 = vmul.f32 %v1296_v3, %v1232_v16 }
 0x166   : > { %v1423_v55 = vmul.f32 0.7978846, %v1391_v42 }
 0x167   : > { %v1516_v63 = vmul.f32 %v1484_v21, %v1260_v2  ;;  %v1360_v11 = vmul.f32 %v1328_v27, %v1232_v16 }
 0x168   : > { %v1854_v44 = vpop.eup %1853  ;;  %1857 = vtanh.f32 %v1423_v55 }
 0x169   : > { %v1580_v4 = vadd.f32 %v1548_v13, %v1516_v63  ;;  %v1485_v56 = vadd.f32 1.0, %v1854_v44  ;;  %v1392_v46 = vadd.f32 %v1360_v11, %v1232_v16 }
 0x16b   : > { %1612 = vst [vmem:[%s2863_s17 + $0xd8] sm:$0xff] %v1580_v4  ;;  %v1517_v39 = vmul.f32 %v1485_v56, %v1261_v15  ;;  %v1424_v12 = vmul.f32 0.7978846, %v1392_v46 }
 0x16d   : > { %v1581_v37 = vadd.f32 %v1549_v58, %v1517_v39  ;;  %1859 = vtanh.f32 %v1424_v12 }
 0x16f   : > { %v1856_v8 = vpop.eup %1855  ;;  %1613 = vst [vmem:[%s2863_s17 + $0xe0] sm:$0xff] %v1581_v37 }
 0x170   : > { %v1486_v48 = vadd.f32 1.0, %v1856_v8 }
 0x172   : > { %v1518_v25 = vmul.f32 %v1486_v48, %v1262_v14 }
 0x174   : > { %v1582_v23 = vadd.f32 %v1550_v29, %v1518_v25 }
 0x175   : > { %v1858_v54 = vpop.eup %1857 }
 0x176   : > { %1614 = vst [vmem:[%s2863_s17 + $0xe8] sm:$0xff] %v1582_v23  ;;  %v1487_v24 = vadd.f32 1.0, %v1858_v54 }
 0x178   : > { %v1519_v40 = vmul.f32 %v1487_v24, %v1263_v41 }
 0x17a   : > { %v1583_v62 = vadd.f32 %v1551_v51, %v1519_v40  ;;  %v1860_v18 = vpop.eup %1859 }
 0x17b   : > { %v1488_v43 = vadd.f32 1.0, %v1860_v18 }
 0x17c   : > { %1615 = vst [vmem:[%s2863_s17 + $0xf0] sm:$0xff] %v1583_v62 }
 0x17d   : > { %v1520_v60 = vmul.f32 %v1488_v43, %v1264_v50 }
 0x17f   : > { %v1584_v26 = vadd.f32 %v1552_v9, %v1520_v60 }
 0x181   : > { %1616 = vst [vmem:[%s2863_s17 + $0xf8] sm:$0xff] %v1584_v26 }
 0x182   : > { %1943 = shalt.err (!%p1940_p0)
}
 0x183   : > { %s1944_s11 = scalar_lea.hbm %s3479_s4, 4096  ;;  %s1948_s28 = scalar_lea.hbm %s3528_s3, 8192 }
 0x184   : > { %p1945_p5 = scmp.ne.s32.totalorder %s3479_s4, %s1944_s11  ;;  %p1949_p4 = scmp.lt.s32.totalorder %s3479_s4, %s3528_s3 }
 0x185   : > { %p1950_p6 = scmp.lt.s32.totalorder %s1948_s28, %s1944_s11 }
 0x186   : > { %p1946_p9 = pnand %p1945_p5, %p3773_p11 }
 0x187   : > { %p1951_p8 = por %p1950_p6, %p1949_p4 }
 0x188   : > { %p1947_p1 = pneg %p1946_p9 }
 0x18a   : > { %p1952_p3 = pnand %p1951_p8, %p1947_p1 }
 0x18c   : > { %1955 = shalt.err (!%p1952_p3)
}
 0x18d   : > { %s2008_s20 = smov 128   ;;  %s2009_s17 = smov 8  }
 0x18e   : > { %1739 = dma.vmem_to_hbm [thread:$0]  (%p3773_p11), %s3481_s23, 4096, %s3479_s4, %s1618_s7, %s2008_s20, %s2008_s20, %s2009_s17  }
 0x18f PF: > { %s1646_s22 = sand.u32 1, %s1986_s12   ;;  %p3774_p7 = scmp.ne.s32.totalorder %s3575_s19, 0 }
 0x190   : > { %p3775_p12 = scmp.ge.s32.totalorder %s1998_s15, 2  ;;  %s1647_s25 = scalar_lea.sflag [#allocation5], %s1646_s22 }
 0x192   : > { %p1750_p10 = pnand %p3775_p12, %p3774_p7 }
 0x194   : > { %p1751_p2 = pneg %p1750_p10 }
 0x196   : > { %1981 = dma.done.wait (%p1751_p2), %s1647_s25, 4096  }
 0x197   : > { %1983 = vsyncadd (%p1751_p2), %s1647_s25, 4294963200  ;;  %p17_p13 = scmp.ge.s32.totalorder %s2084_s24, 4   ;;  %s3776_s12 = smov %s1990_s13 }
 0x198   : > { %s3777_s13 = smov %s1994_s14  ;;  %s3778_s14 = smov %s2101_s5 }
 0x199   : > { %s3779_s15 = smov %s2084_s24  ;;  %19 = sbr.rel (!%p17_p13) target bundleno = 6 (0x6), region = 84 }
 0x19e   :  { %1652 = vsyncpa [#allocation4], 1 }
 0x19f   :  { %1654 = vsyncpa [#allocation4 + $0x1], 1 }
 0x1a0   :  { %1655 = vsyncpa [#allocation7], 1 }
 0x1a1   :  { %1656 = vsyncpa [#allocation5], 1 }
 0x1a2   :  { %1658 = vsyncpa [#allocation5 + $0x1], 1 }

</bundles_post_ra>
